<compile_context>
chip_gen: v5e
topology: v5e:2x2
jax: 0.10.0
libtpu: 0.0.40
codegen_flags: <defaults>
</compile_context>

<pallas_src>
import functools
import math

import jax
import jax.numpy as jnp
from jax import lax
from jax.experimental import pallas as pl

NEG_SLOPE = 0.2     # LeakyReLU(0.2)
BN_EPS = 1e-5


# ---------------------------------------------------------------------------
# Pallas kernel: fused conv(matmul) + bias + BatchNorm(train) + LeakyReLU
# ---------------------------------------------------------------------------
def _fused_conv_kernel(*refs, has_bias, has_bn, act, inv_m):
    """refs = (w, patches, [bias], [gamma, beta], out).

    w:        (Cout, K)  bf16   kernel taps, (ki,kj,cin)-major
    patches:  (K, M)     bf16   im2col patches, M = B*Ho*Wo on the lane axis
    bias/gamma/beta: (Cout, 1)  f32
    out:      (Cout, M)  f32    lane-dense along M
    """
    w_ref, p_ref = refs[0], refs[1]
    i = 2
    b_ref = None
    g_ref = bt_ref = None
    if has_bias:
        b_ref = refs[i]
        i += 1
    if has_bn:
        g_ref, bt_ref = refs[i], refs[i + 1]
        i += 2
    o_ref = refs[i]

    # MXU matmul with f32 accumulation; single shot (whole K, whole M).
    r = jnp.dot(w_ref[...], p_ref[...], preferred_element_type=jnp.float32)

    if has_bias:
        r = r + b_ref[...]                       # (Cout,1) broadcast over lanes

    if has_bn:
        # Training-mode BatchNorm over the batch*spatial axis (lane axis).
        # Two-pass centered variance (avoids E[x^2]-E[x]^2 cancellation).
        mean = jnp.sum(r, axis=1, keepdims=True) * inv_m
        cent = r - mean
        var = jnp.sum(cent * cent, axis=1, keepdims=True) * inv_m
        r = cent * (g_ref[...] * lax.rsqrt(var + BN_EPS)) + bt_ref[...]

    if act:
        r = jnp.where(r >= 0, r, NEG_SLOPE * r)  # LeakyReLU(0.2)

    o_ref[...] = r.astype(o_ref.dtype)


def fused_conv(patches, w, b, gamma, beta, *, act):
    """One pallas_call: (Cout,K)@(K,M) + bias -> BN -> LeakyReLU, all in VMEM."""
    cout = w.shape[0]
    m = patches.shape[1]
    args = [w, patches]
    if b is not None:
        args.append(b)
    if gamma is not None:
        args += [gamma, beta]
    kernel = functools.partial(
        _fused_conv_kernel,
        has_bias=b is not None,
        has_bn=gamma is not None,
        act=act,
        inv_m=1.0 / float(m),
    )
    # No grid: whole-array blocks (largest operand ~0.3 MiB) -> no tiling, no
    # accumulator scratch, no masked 128-lane channel padding, one launch.
    return pl.pallas_call(
        kernel,
        out_shape=jax.ShapeDtypeStruct((cout, m), jnp.float32),
    )(*args)


# ---------------------------------------------------------------------------
# Thin JAX glue (im2col / pad / upsample / concat) around the fused kernel
# ---------------------------------------------------------------------------
# TODO(synk): im2col is still built in JAX glue (one fused XLA op per conv);
# fusing it into the Pallas kernel via shifted in-kernel window reads would
# remove the remaining patch-matrix HBM traffic.
def _im2col_cf(x, kh, kw, stride, pad, pad_mode):
    """x: (C, B, H, W) f32 -> patches (kh*kw*C, B*Ho*Wo) bf16."""
    if pad > 0:
        x = jnp.pad(x, ((0, 0), (0, 0), (pad, pad), (pad, pad)), mode=pad_mode)
    C, B, Hp, Wp = x.shape
    Ho = (Hp - kh) // stride + 1
    Wo = (Wp - kw) // stride + 1
    taps = []
    for i in range(kh):
        for j in range(kw):
            taps.append(x[:, :, i:i + stride * Ho:stride,
                          j:j + stride * Wo:stride])
    p = jnp.stack(taps, axis=0)                  # (kh*kw, C, B, Ho, Wo)
    p = p.reshape(kh * kw * C, B * Ho * Wo)
    return p.astype(jnp.bfloat16), (B, Ho, Wo)


def conv_layer(x_flat, spatial, p, *, stride=1, pad=0, pad_mode="constant",
               bn=None, act=False):
    """x_flat: (Cin, B*H*W) f32 -> ((Cout, B*Ho*Wo) f32, (B, Ho, Wo))."""
    B, H, W = spatial
    cin, k = p["cin"], p["k"]
    patches, sp_out = _im2col_cf(x_flat.reshape(cin, B, H, W),
                                 k, k, stride, pad, pad_mode)
    gamma, beta = bn if bn is not None else (None, None)
    out = fused_conv(patches, p["w"], p["b"], gamma, beta, act=act)
    return out, sp_out


def upsample_bilinear_2x(x_flat, spatial):
    """nn.UpsamplingBilinear2d(scale_factor=2) (align_corners=True), (C,M) layout."""
    B, H, W = spatial
    C = x_flat.shape[0]
    x = x_flat.reshape(C, B, H, W)

    def interp(y, axis, n_in):
        n_out = 2 * n_in
        denom = max(n_out - 1, 1)
        pos = jnp.arange(n_out, dtype=jnp.float32) * (n_in - 1) / denom
        i0 = jnp.floor(pos).astype(jnp.int32)
        i1 = jnp.minimum(i0 + 1, n_in - 1)
        wgt = pos - i0.astype(jnp.float32)
        shape = [1] * y.ndim
        shape[axis] = n_out
        wgt = wgt.reshape(shape)
        y0 = jnp.take(y, i0, axis=axis)
        y1 = jnp.take(y, i1, axis=axis)
        return y0 * (1.0 - wgt) + y1 * wgt

    x = interp(x, 2, H)
    x = interp(x, 3, W)
    return x.reshape(C, B * 2 * H * 2 * W), (B, 2 * H, 2 * W)


# ---------------------------------------------------------------------------
# Parameter init (mirrors the torch module's __init__ shapes)
# ---------------------------------------------------------------------------
class KeyGen:
    def __init__(self, key):
        self._key = key

    def __call__(self):
        self._key, k = jax.random.split(self._key)
        return k


def _conv_param(key, cout, cin, k, *, bias):
    """PyTorch Conv2d init; weight pre-flattened to (Cout, k*k*Cin) bf16."""
    wkey, bkey = jax.random.split(key)
    bound = 1.0 / math.sqrt(cin * k * k)         # kaiming_uniform(a=sqrt(5))
    w4 = jax.random.uniform(wkey, (cout, cin, k, k), jnp.float32, -bound, bound)
    wf = jnp.transpose(w4, (0, 2, 3, 1)).reshape(cout, k * k * cin)
    p = {"w": wf.astype(jnp.bfloat16), "cin": cin, "cout": cout, "k": k,
         "b": None}
    if bias:
        p["b"] = jax.random.uniform(bkey, (cout, 1), jnp.float32, -bound, bound)
    return p


def _bn_params(key, c):
    k1, k2 = jax.random.split(key)
    gamma = 1.0 + 0.1 * jax.random.normal(k1, (c, 1), jnp.float32)
    beta = 0.1 * jax.random.normal(k2, (c, 1), jnp.float32)
    return gamma, beta


# --- DownBlock ---
def init_down_block(kg, in_c, out_c, use_norm):
    mid = in_c
    p = {"c1": _conv_param(kg(), mid, in_c, 3, bias=not use_norm)}
    if use_norm:
        p["bn1"] = _bn_params(kg(), mid)
    p["c2"] = _conv_param(kg(), out_c, mid, 4, bias=not use_norm)
    if use_norm:
        p["bn2"] = _bn_params(kg(), out_c)
    return p


def apply_down_block(p, x, sp):
    # prep conv: 3x3 'same' (zero pad 1), stride 1 -> [BN] -> LeakyReLU
    x, sp = conv_layer(x, sp, p["c1"], stride=1, pad=1, pad_mode="constant",
                       bn=p.get("bn1"), act=True)
    # ReflectionPad2d(1) + 4x4 conv, stride 2 -> [BN] -> LeakyReLU
    x, sp = conv_layer(x, sp, p["c2"], stride=2, pad=1, pad_mode="reflect",
                       bn=p.get("bn2"), act=True)
    return x, sp


# --- UpBlock (bilinear mode, post_conv=True) ---
def init_up_block(kg, in_c, out_c, use_norm):
    p = {"c1": _conv_param(kg(), out_c, in_c, 3, bias=not use_norm)}
    if use_norm:
        p["bn1"] = _bn_params(kg(), out_c)
    p["c2"] = _conv_param(kg(), out_c, out_c, 3, bias=not use_norm)
    if use_norm:
        p["bn2"] = _bn_params(kg(), out_c)
    return p


def apply_up_block(p, x, sp):
    x, sp = upsample_bilinear_2x(x, sp)
    x, sp = conv_layer(x, sp, p["c1"], stride=1, pad=1, bn=p.get("bn1"), act=True)
    x, sp = conv_layer(x, sp, p["c2"], stride=1, pad=1, bn=p.get("bn2"), act=True)
    return x, sp


# --- UnetSkipConnectionBlock (recursive) ---
def init_skip_block(kg, levels):
    outer, inner, use_norm = levels[0]
    p = {"down": init_down_block(kg, outer, inner, use_norm)}
    if len(levels) > 1:
        p["sub"] = init_skip_block(kg, levels[1:])
        up_in = 2 * inner
    else:
        up_in = inner
    p["up"] = init_up_block(kg, up_in, outer, use_norm)
    return p


def apply_skip_block(p, levels, x, sp):
    y, sp_d = apply_down_block(p["down"], x, sp)
    if len(levels) > 1:
        y, sp_d = apply_skip_block(p["sub"], levels[1:], y, sp_d)
    y, _ = apply_up_block(p["up"], y, sp_d)
    return jnp.concatenate([x, y], axis=0), sp     # channel concat (axis 0)


# --- Unet ---
def make_levels(nf0, num_down, max_channels):
    levels = []
    for i in range(num_down - 1):
        levels.append((min(2 ** i * nf0, max_channels),
                       min(2 ** (i + 1) * nf0, max_channels),
                       True))                      # norm = BatchNorm2d
    nc = min(2 ** (num_down - 1) * nf0, max_channels)
    levels.append((nc, nc, False))                 # innermost: norm = None
    return levels


def init_unet(key, in_channels, out_channels, nf0, num_down, max_channels):
    kg = KeyGen(key)
    levels = make_levels(nf0, num_down, max_channels)
    params = {
        "in_conv": _conv_param(kg(), nf0, in_channels, 3, bias=False),  # BN follows
        "in_bn": _bn_params(kg(), nf0),
        "unet": init_skip_block(kg, levels),
        "out_conv": _conv_param(kg(), out_channels, 2 * nf0, 3, bias=True),
    }
    return params, levels


def apply_unet(params, levels, x_nchw):
    # TODO(synk): dropout paths (use_dropout=True) and BN running-stat updates
    # are not modeled; this config uses use_dropout=False and a single
    # training-mode forward, matching the reference forward pass.
    B, C, H, W = x_nchw.shape
    x_cf = jnp.transpose(x_nchw, (1, 0, 2, 3)).astype(jnp.float32)   # (C,B,H,W)
    x_flat = x_cf.reshape(C, B * H * W)
    sp = (B, H, W)

    h, sp = conv_layer(x_flat, sp, params["in_conv"], stride=1, pad=1,
                       bn=params["in_bn"], act=True)
    h, sp = apply_skip_block(params["unet"], levels, h, sp)
    out, _ = conv_layer(h, sp, params["out_conv"], stride=1, pad=1,
                        bn=None, act=False)        # outermost_linear=True
    out = out + x_flat                              # residual add (Unet.forward)
    cout = out.shape[0]
    out = out.reshape(cout, B, H, W)
    return jnp.transpose(out, (1, 0, 2, 3))         # back to NCHW


# ---------------------------------------------------------------------------
if __name__ == "__main__":
    key = jax.random.PRNGKey(0)
    pkey, xkey = jax.random.split(key)

    B, C, H, W = 2, 3, 16, 16
    nf0, num_down, max_channels = 8, 2, 32

    params, levels = init_unet(pkey, C, C, nf0, num_down, max_channels)
    x = jax.random.normal(xkey, (B, C, H, W), jnp.float32)

    fwd = jax.jit(lambda inp: apply_unet(params, levels, inp))
    y = fwd(x)
    jax.block_until_ready(y)

    assert y.shape == (B, C, H, W), y.shape
    assert bool(jnp.isfinite(y).all())
    print("KERNEL_OK")
</pallas_src>

<mosaic_0001>
module attributes {stable_mosaic.version = 11 : i64} {
  func.func @_fused_conv_kernel(%arg0: memref<8x27xbf16, #tpu.memory_space<vmem>>, %arg1: memref<27x512xbf16, #tpu.memory_space<vmem>>, %arg2: memref<8x1xf32, #tpu.memory_space<vmem>>, %arg3: memref<8x1xf32, #tpu.memory_space<vmem>>, %arg4: memref<8x512xf32, #tpu.memory_space<vmem>>) attributes {dimension_semantics = [], scalar_prefetch = 0 : i64, scratch_operands = 0 : i64, tpu.core_type = #tpu.core_type<tc>} {
    %c0 = arith.constant 0 : index
    %c0_0 = arith.constant 0 : index
    %0 = vector.load %arg0[%c0, %c0_0] : memref<8x27xbf16, #tpu.memory_space<vmem>>, vector<8x27xbf16>
    %c0_1 = arith.constant 0 : index
    %c0_2 = arith.constant 0 : index
    %1 = vector.load %arg1[%c0_1, %c0_2] : memref<27x512xbf16, #tpu.memory_space<vmem>>, vector<27x512xbf16>
    %cst = arith.constant dense<0.000000e+00> : vector<8x512xf32>
    %2 = tpu.matmul %0, %1, %cst {dimension_numbers = #tpu.dot_dimension_numbers<[1], [0], [0], [1], [0, 0, 1, 1], [], []>} : vector<8x27xbf16>, vector<27x512xbf16>, vector<8x512xf32> -> vector<8x512xf32>
    %cst_3 = arith.constant dense<0.000000e+00> : vector<8xf32>
    %3 = vector.multi_reduction <add>, %2, %cst_3 [1] : vector<8x512xf32> to vector<8xf32>
    %4 = vector.shape_cast %3 : vector<8xf32> to vector<8x1xf32>
    %cst_4 = arith.constant 0.001953125 : f32
    %5 = vector.broadcast %cst_4 : f32 to vector<8x1xf32>
    %6 = arith.mulf %4, %5 : vector<8x1xf32>
    %7 = vector.broadcast %6 : vector<8x1xf32> to vector<8x512xf32>
    %8 = arith.subf %2, %7 : vector<8x512xf32>
    %9 = arith.mulf %8, %8 : vector<8x512xf32>
    %cst_5 = arith.constant dense<0.000000e+00> : vector<8xf32>
    %10 = vector.multi_reduction <add>, %9, %cst_5 [1] : vector<8x512xf32> to vector<8xf32>
    %11 = vector.shape_cast %10 : vector<8xf32> to vector<8x1xf32>
    %cst_6 = arith.constant 0.001953125 : f32
    %12 = vector.broadcast %cst_6 : f32 to vector<8x1xf32>
    %13 = arith.mulf %11, %12 : vector<8x1xf32>
    %c0_7 = arith.constant 0 : index
    %c0_8 = arith.constant 0 : index
    %14 = vector.load %arg2[%c0_7, %c0_8] : memref<8x1xf32, #tpu.memory_space<vmem>>, vector<8x1xf32>
    %cst_9 = arith.constant 9.99999974E-6 : f32
    %15 = vector.broadcast %cst_9 : f32 to vector<8x1xf32>
    %16 = arith.addf %13, %15 : vector<8x1xf32>
    %17 = math.rsqrt %16 : vector<8x1xf32>
    %18 = arith.mulf %14, %17 : vector<8x1xf32>
    %19 = vector.broadcast %18 : vector<8x1xf32> to vector<8x512xf32>
    %20 = arith.mulf %8, %19 : vector<8x512xf32>
    %c0_10 = arith.constant 0 : index
    %c0_11 = arith.constant 0 : index
    %21 = vector.load %arg3[%c0_10, %c0_11] : memref<8x1xf32, #tpu.memory_space<vmem>>, vector<8x1xf32>
    %22 = vector.broadcast %21 : vector<8x1xf32> to vector<8x512xf32>
    %23 = arith.addf %20, %22 : vector<8x512xf32>
    %cst_12 = arith.constant 0.000000e+00 : f32
    %24 = vector.broadcast %cst_12 : f32 to vector<8x512xf32>
    %25 = arith.cmpf oge, %23, %24 : vector<8x512xf32>
    %cst_13 = arith.constant 2.000000e-01 : f32
    %26 = vector.broadcast %cst_13 : f32 to vector<8x512xf32>
    %27 = arith.mulf %26, %23 : vector<8x512xf32>
    %28 = arith.select %25, %23, %27 : vector<8x512xi1>, vector<8x512xf32>
    %c0_14 = arith.constant 0 : index
    %c0_15 = arith.constant 0 : index
    %29 = vector.load %arg4[%c0_14, %c0_15] : memref<8x512xf32, #tpu.memory_space<vmem>>, vector<8x512xf32>
    tpu.vector_store %arg4[%c0_14, %c0_15], %28 {strides = array<i32>} : memref<8x512xf32, #tpu.memory_space<vmem>>, vector<8x512xf32>,
    return
  }
}

module attributes {stable_mosaic.version = 11 : i64} {
  func.func @_fused_conv_kernel(%arg0: memref<8x72xbf16, #tpu.memory_space<vmem>>, %arg1: memref<72x512xbf16, #tpu.memory_space<vmem>>, %arg2: memref<8x1xf32, #tpu.memory_space<vmem>>, %arg3: memref<8x1xf32, #tpu.memory_space<vmem>>, %arg4: memref<8x512xf32, #tpu.memory_space<vmem>>) attributes {dimension_semantics = [], scalar_prefetch = 0 : i64, scratch_operands = 0 : i64, tpu.core_type = #tpu.core_type<tc>} {
    %c0 = arith.constant 0 : index
    %c0_0 = arith.constant 0 : index
    %0 = vector.load %arg0[%c0, %c0_0] : memref<8x72xbf16, #tpu.memory_space<vmem>>, vector<8x72xbf16>
    %c0_1 = arith.constant 0 : index
    %c0_2 = arith.constant 0 : index
    %1 = vector.load %arg1[%c0_1, %c0_2] : memref<72x512xbf16, #tpu.memory_space<vmem>>, vector<72x512xbf16>
    %cst = arith.constant dense<0.000000e+00> : vector<8x512xf32>
    %2 = tpu.matmul %0, %1, %cst {dimension_numbers = #tpu.dot_dimension_numbers<[1], [0], [0], [1], [0, 0, 1, 1], [], []>} : vector<8x72xbf16>, vector<72x512xbf16>, vector<8x512xf32> -> vector<8x512xf32>
    %cst_3 = arith.constant dense<0.000000e+00> : vector<8xf32>
    %3 = vector.multi_reduction <add>, %2, %cst_3 [1] : vector<8x512xf32> to vector<8xf32>
    %4 = vector.shape_cast %3 : vector<8xf32> to vector<8x1xf32>
    %cst_4 = arith.constant 0.001953125 : f32
    %5 = vector.broadcast %cst_4 : f32 to vector<8x1xf32>
    %6 = arith.mulf %4, %5 : vector<8x1xf32>
    %7 = vector.broadcast %6 : vector<8x1xf32> to vector<8x512xf32>
    %8 = arith.subf %2, %7 : vector<8x512xf32>
    %9 = arith.mulf %8, %8 : vector<8x512xf32>
    %cst_5 = arith.constant dense<0.000000e+00> : vector<8xf32>
    %10 = vector.multi_reduction <add>, %9, %cst_5 [1] : vector<8x512xf32> to vector<8xf32>
    %11 = vector.shape_cast %10 : vector<8xf32> to vector<8x1xf32>
    %cst_6 = arith.constant 0.001953125 : f32
    %12 = vector.broadcast %cst_6 : f32 to vector<8x1xf32>
    %13 = arith.mulf %11, %12 : vector<8x1xf32>
    %c0_7 = arith.constant 0 : index
    %c0_8 = arith.constant 0 : index
    %14 = vector.load %arg2[%c0_7, %c0_8] : memref<8x1xf32, #tpu.memory_space<vmem>>, vector<8x1xf32>
    %cst_9 = arith.constant 9.99999974E-6 : f32
    %15 = vector.broadcast %cst_9 : f32 to vector<8x1xf32>
    %16 = arith.addf %13, %15 : vector<8x1xf32>
    %17 = math.rsqrt %16 : vector<8x1xf32>
    %18 = arith.mulf %14, %17 : vector<8x1xf32>
    %19 = vector.broadcast %18 : vector<8x1xf32> to vector<8x512xf32>
    %20 = arith.mulf %8, %19 : vector<8x512xf32>
    %c0_10 = arith.constant 0 : index
    %c0_11 = arith.constant 0 : index
    %21 = vector.load %arg3[%c0_10, %c0_11] : memref<8x1xf32, #tpu.memory_space<vmem>>, vector<8x1xf32>
    %22 = vector.broadcast %21 : vector<8x1xf32> to vector<8x512xf32>
    %23 = arith.addf %20, %22 : vector<8x512xf32>
    %cst_12 = arith.constant 0.000000e+00 : f32
    %24 = vector.broadcast %cst_12 : f32 to vector<8x512xf32>
    %25 = arith.cmpf oge, %23, %24 : vector<8x512xf32>
    %cst_13 = arith.constant 2.000000e-01 : f32
    %26 = vector.broadcast %cst_13 : f32 to vector<8x512xf32>
    %27 = arith.mulf %26, %23 : vector<8x512xf32>
    %28 = arith.select %25, %23, %27 : vector<8x512xi1>, vector<8x512xf32>
    %c0_14 = arith.constant 0 : index
    %c0_15 = arith.constant 0 : index
    %29 = vector.load %arg4[%c0_14, %c0_15] : memref<8x512xf32, #tpu.memory_space<vmem>>, vector<8x512xf32>
    tpu.vector_store %arg4[%c0_14, %c0_15], %28 {strides = array<i32>} : memref<8x512xf32, #tpu.memory_space<vmem>>, vector<8x512xf32>,
    return
  }
}

module attributes {stable_mosaic.version = 11 : i64} {
  func.func @_fused_conv_kernel(%arg0: memref<16x128xbf16, #tpu.memory_space<vmem>>, %arg1: memref<128x128xbf16, #tpu.memory_space<vmem>>, %arg2: memref<16x1xf32, #tpu.memory_space<vmem>>, %arg3: memref<16x1xf32, #tpu.memory_space<vmem>>, %arg4: memref<16x128xf32, #tpu.memory_space<vmem>>) attributes {dimension_semantics = [], scalar_prefetch = 0 : i64, scratch_operands = 0 : i64, tpu.core_type = #tpu.core_type<tc>} {
    %c0 = arith.constant 0 : index
    %c0_0 = arith.constant 0 : index
    %0 = vector.load %arg0[%c0, %c0_0] : memref<16x128xbf16, #tpu.memory_space<vmem>>, vector<16x128xbf16>
    %c0_1 = arith.constant 0 : index
    %c0_2 = arith.constant 0 : index
    %1 = vector.load %arg1[%c0_1, %c0_2] : memref<128x128xbf16, #tpu.memory_space<vmem>>, vector<128x128xbf16>
    %cst = arith.constant dense<0.000000e+00> : vector<16x128xf32>
    %2 = tpu.matmul %0, %1, %cst {dimension_numbers = #tpu.dot_dimension_numbers<[1], [0], [0], [1], [0, 0, 1, 1], [], []>} : vector<16x128xbf16>, vector<128x128xbf16>, vector<16x128xf32> -> vector<16x128xf32>
    %cst_3 = arith.constant dense<0.000000e+00> : vector<16xf32>
    %3 = vector.multi_reduction <add>, %2, %cst_3 [1] : vector<16x128xf32> to vector<16xf32>
    %4 = vector.shape_cast %3 : vector<16xf32> to vector<16x1xf32>
    %cst_4 = arith.constant 7.812500e-03 : f32
    %5 = vector.broadcast %cst_4 : f32 to vector<16x1xf32>
    %6 = arith.mulf %4, %5 : vector<16x1xf32>
    %7 = vector.broadcast %6 : vector<16x1xf32> to vector<16x128xf32>
    %8 = arith.subf %2, %7 : vector<16x128xf32>
    %9 = arith.mulf %8, %8 : vector<16x128xf32>
    %cst_5 = arith.constant dense<0.000000e+00> : vector<16xf32>
    %10 = vector.multi_reduction <add>, %9, %cst_5 [1] : vector<16x128xf32> to vector<16xf32>
    %11 = vector.shape_cast %10 : vector<16xf32> to vector<16x1xf32>
    %cst_6 = arith.constant 7.812500e-03 : f32
    %12 = vector.broadcast %cst_6 : f32 to vector<16x1xf32>
    %13 = arith.mulf %11, %12 : vector<16x1xf32>
    %c0_7 = arith.constant 0 : index
    %c0_8 = arith.constant 0 : index
    %14 = vector.load %arg2[%c0_7, %c0_8] : memref<16x1xf32, #tpu.memory_space<vmem>>, vector<16x1xf32>
    %cst_9 = arith.constant 9.99999974E-6 : f32
    %15 = vector.broadcast %cst_9 : f32 to vector<16x1xf32>
    %16 = arith.addf %13, %15 : vector<16x1xf32>
    %17 = math.rsqrt %16 : vector<16x1xf32>
    %18 = arith.mulf %14, %17 : vector<16x1xf32>
    %19 = vector.broadcast %18 : vector<16x1xf32> to vector<16x128xf32>
    %20 = arith.mulf %8, %19 : vector<16x128xf32>
    %c0_10 = arith.constant 0 : index
    %c0_11 = arith.constant 0 : index
    %21 = vector.load %arg3[%c0_10, %c0_11] : memref<16x1xf32, #tpu.memory_space<vmem>>, vector<16x1xf32>
    %22 = vector.broadcast %21 : vector<16x1xf32> to vector<16x128xf32>
    %23 = arith.addf %20, %22 : vector<16x128xf32>
    %cst_12 = arith.constant 0.000000e+00 : f32
    %24 = vector.broadcast %cst_12 : f32 to vector<16x128xf32>
    %25 = arith.cmpf oge, %23, %24 : vector<16x128xf32>
    %cst_13 = arith.constant 2.000000e-01 : f32
    %26 = vector.broadcast %cst_13 : f32 to vector<16x128xf32>
    %27 = arith.mulf %26, %23 : vector<16x128xf32>
    %28 = arith.select %25, %23, %27 : vector<16x128xi1>, vector<16x128xf32>
    %c0_14 = arith.constant 0 : index
    %c0_15 = arith.constant 0 : index
    %29 = vector.load %arg4[%c0_14, %c0_15] : memref<16x128xf32, #tpu.memory_space<vmem>>, vector<16x128xf32>
    tpu.vector_store %arg4[%c0_14, %c0_15], %28 {strides = array<i32>} : memref<16x128xf32, #tpu.memory_space<vmem>>, vector<16x128xf32>,
    return
  }
}

module attributes {stable_mosaic.version = 11 : i64} {
  func.func @_fused_conv_kernel(%arg0: memref<16x144xbf16, #tpu.memory_space<vmem>>, %arg1: memref<144x128xbf16, #tpu.memory_space<vmem>>, %arg2: memref<16x1xf32, #tpu.memory_space<vmem>>, %arg3: memref<16x128xf32, #tpu.memory_space<vmem>>) attributes {dimension_semantics = [], scalar_prefetch = 0 : i64, scratch_operands = 0 : i64, tpu.core_type = #tpu.core_type<tc>} {
    %c0 = arith.constant 0 : index
    %c0_0 = arith.constant 0 : index
    %0 = vector.load %arg0[%c0, %c0_0] : memref<16x144xbf16, #tpu.memory_space<vmem>>, vector<16x144xbf16>
    %c0_1 = arith.constant 0 : index
    %c0_2 = arith.constant 0 : index
    %1 = vector.load %arg1[%c0_1, %c0_2] : memref<144x128xbf16, #tpu.memory_space<vmem>>, vector<144x128xbf16>
    %cst = arith.constant dense<0.000000e+00> : vector<16x128xf32>
    %2 = tpu.matmul %0, %1, %cst {dimension_numbers = #tpu.dot_dimension_numbers<[1], [0], [0], [1], [0, 0, 1, 1], [], []>} : vector<16x144xbf16>, vector<144x128xbf16>, vector<16x128xf32> -> vector<16x128xf32>
    %c0_3 = arith.constant 0 : index
    %c0_4 = arith.constant 0 : index
    %3 = vector.load %arg2[%c0_3, %c0_4] : memref<16x1xf32, #tpu.memory_space<vmem>>, vector<16x1xf32>
    %4 = vector.broadcast %3 : vector<16x1xf32> to vector<16x128xf32>
    %5 = arith.addf %2, %4 : vector<16x128xf32>
    %cst_5 = arith.constant 0.000000e+00 : f32
    %6 = vector.broadcast %cst_5 : f32 to vector<16x128xf32>
    %7 = arith.cmpf oge, %5, %6 : vector<16x128xf32>
    %cst_6 = arith.constant 2.000000e-01 : f32
    %8 = vector.broadcast %cst_6 : f32 to vector<16x128xf32>
    %9 = arith.mulf %8, %5 : vector<16x128xf32>
    %10 = arith.select %7, %5, %9 : vector<16x128xi1>, vector<16x128xf32>
    %c0_7 = arith.constant 0 : index
    %c0_8 = arith.constant 0 : index
    %11 = vector.load %arg3[%c0_7, %c0_8] : memref<16x128xf32, #tpu.memory_space<vmem>>, vector<16x128xf32>
    tpu.vector_store %arg3[%c0_7, %c0_8], %10 {strides = array<i32>} : memref<16x128xf32, #tpu.memory_space<vmem>>, vector<16x128xf32>,
    return
  }
}

module attributes {stable_mosaic.version = 11 : i64} {
  func.func @_fused_conv_kernel(%arg0: memref<16x256xbf16, #tpu.memory_space<vmem>>, %arg1: memref<256x32xbf16, #tpu.memory_space<vmem>>, %arg2: memref<16x1xf32, #tpu.memory_space<vmem>>, %arg3: memref<16x32xf32, #tpu.memory_space<vmem>>) attributes {dimension_semantics = [], scalar_prefetch = 0 : i64, scratch_operands = 0 : i64, tpu.core_type = #tpu.core_type<tc>} {
    %c0 = arith.constant 0 : index
    %c0_0 = arith.constant 0 : index
    %0 = vector.load %arg0[%c0, %c0_0] : memref<16x256xbf16, #tpu.memory_space<vmem>>, vector<16x256xbf16>
    %c0_1 = arith.constant 0 : index
    %c0_2 = arith.constant 0 : index
    %1 = vector.load %arg1[%c0_1, %c0_2] : memref<256x32xbf16, #tpu.memory_space<vmem>>, vector<256x32xbf16>
    %cst = arith.constant dense<0.000000e+00> : vector<16x32xf32>
    %2 = tpu.matmul %0, %1, %cst {dimension_numbers = #tpu.dot_dimension_numbers<[1], [0], [0], [1], [0, 0, 1, 1], [], []>} : vector<16x256xbf16>, vector<256x32xbf16>, vector<16x32xf32> -> vector<16x32xf32>
    %c0_3 = arith.constant 0 : index
    %c0_4 = arith.constant 0 : index
    %3 = vector.load %arg2[%c0_3, %c0_4] : memref<16x1xf32, #tpu.memory_space<vmem>>, vector<16x1xf32>
    %4 = vector.broadcast %3 : vector<16x1xf32> to vector<16x32xf32>
    %5 = arith.addf %2, %4 : vector<16x32xf32>
    %cst_5 = arith.constant 0.000000e+00 : f32
    %6 = vector.broadcast %cst_5 : f32 to vector<16x32xf32>
    %7 = arith.cmpf oge, %5, %6 : vector<16x32xf32>
    %cst_6 = arith.constant 2.000000e-01 : f32
    %8 = vector.broadcast %cst_6 : f32 to vector<16x32xf32>
    %9 = arith.mulf %8, %5 : vector<16x32xf32>
    %10 = arith.select %7, %5, %9 : vector<16x32xi1>, vector<16x32xf32>
    %c0_7 = arith.constant 0 : index
    %c0_8 = arith.constant 0 : index
    %11 = vector.load %arg3[%c0_7, %c0_8] : memref<16x32xf32, #tpu.memory_space<vmem>>, vector<16x32xf32>
    tpu.vector_store %arg3[%c0_7, %c0_8], %10 {strides = array<i32>} : memref<16x32xf32, #tpu.memory_space<vmem>>, vector<16x32xf32>,
    return
  }
}

module attributes {stable_mosaic.version = 11 : i64} {
  func.func @_fused_conv_kernel(%arg0: memref<8x288xbf16, #tpu.memory_space<vmem>>, %arg1: memref<288x512xbf16, #tpu.memory_space<vmem>>, %arg2: memref<8x1xf32, #tpu.memory_space<vmem>>, %arg3: memref<8x1xf32, #tpu.memory_space<vmem>>, %arg4: memref<8x512xf32, #tpu.memory_space<vmem>>) attributes {dimension_semantics = [], scalar_prefetch = 0 : i64, scratch_operands = 0 : i64, tpu.core_type = #tpu.core_type<tc>} {
    %c0 = arith.constant 0 : index
    %c0_0 = arith.constant 0 : index
    %0 = vector.load %arg0[%c0, %c0_0] : memref<8x288xbf16, #tpu.memory_space<vmem>>, vector<8x288xbf16>
    %c0_1 = arith.constant 0 : index
    %c0_2 = arith.constant 0 : index
    %1 = vector.load %arg1[%c0_1, %c0_2] : memref<288x512xbf16, #tpu.memory_space<vmem>>, vector<288x512xbf16>
    %cst = arith.constant dense<0.000000e+00> : vector<8x512xf32>
    %2 = tpu.matmul %0, %1, %cst {dimension_numbers = #tpu.dot_dimension_numbers<[1], [0], [0], [1], [0, 0, 1, 1], [], []>} : vector<8x288xbf16>, vector<288x512xbf16>, vector<8x512xf32> -> vector<8x512xf32>
    %cst_3 = arith.constant dense<0.000000e+00> : vector<8xf32>
    %3 = vector.multi_reduction <add>, %2, %cst_3 [1] : vector<8x512xf32> to vector<8xf32>
    %4 = vector.shape_cast %3 : vector<8xf32> to vector<8x1xf32>
    %cst_4 = arith.constant 0.001953125 : f32
    %5 = vector.broadcast %cst_4 : f32 to vector<8x1xf32>
    %6 = arith.mulf %4, %5 : vector<8x1xf32>
    %7 = vector.broadcast %6 : vector<8x1xf32> to vector<8x512xf32>
    %8 = arith.subf %2, %7 : vector<8x512xf32>
    %9 = arith.mulf %8, %8 : vector<8x512xf32>
    %cst_5 = arith.constant dense<0.000000e+00> : vector<8xf32>
    %10 = vector.multi_reduction <add>, %9, %cst_5 [1] : vector<8x512xf32> to vector<8xf32>
    %11 = vector.shape_cast %10 : vector<8xf32> to vector<8x1xf32>
    %cst_6 = arith.constant 0.001953125 : f32
    %12 = vector.broadcast %cst_6 : f32 to vector<8x1xf32>
    %13 = arith.mulf %11, %12 : vector<8x1xf32>
    %c0_7 = arith.constant 0 : index
    %c0_8 = arith.constant 0 : index
    %14 = vector.load %arg2[%c0_7, %c0_8] : memref<8x1xf32, #tpu.memory_space<vmem>>, vector<8x1xf32>
    %cst_9 = arith.constant 9.99999974E-6 : f32
    %15 = vector.broadcast %cst_9 : f32 to vector<8x1xf32>
    %16 = arith.addf %13, %15 : vector<8x1xf32>
    %17 = math.rsqrt %16 : vector<8x1xf32>
    %18 = arith.mulf %14, %17 : vector<8x1xf32>
    %19 = vector.broadcast %18 : vector<8x1xf32> to vector<8x512xf32>
    %20 = arith.mulf %8, %19 : vector<8x512xf32>
    %c0_10 = arith.constant 0 : index
    %c0_11 = arith.constant 0 : index
    %21 = vector.load %arg3[%c0_10, %c0_11] : memref<8x1xf32, #tpu.memory_space<vmem>>, vector<8x1xf32>
    %22 = vector.broadcast %21 : vector<8x1xf32> to vector<8x512xf32>
    %23 = arith.addf %20, %22 : vector<8x512xf32>
    %cst_12 = arith.constant 0.000000e+00 : f32
    %24 = vector.broadcast %cst_12 : f32 to vector<8x512xf32>
    %25 = arith.cmpf oge, %23, %24 : vector<8x512xf32>
    %cst_13 = arith.constant 2.000000e-01 : f32
    %26 = vector.broadcast %cst_13 : f32 to vector<8x512xf32>
    %27 = arith.mulf %26, %23 : vector<8x512xf32>
    %28 = arith.select %25, %23, %27 : vector<8x512xi1>, vector<8x512xf32>
    %c0_14 = arith.constant 0 : index
    %c0_15 = arith.constant 0 : index
    %29 = vector.load %arg4[%c0_14, %c0_15] : memref<8x512xf32, #tpu.memory_space<vmem>>, vector<8x512xf32>
    tpu.vector_store %arg4[%c0_14, %c0_15], %28 {strides = array<i32>} : memref<8x512xf32, #tpu.memory_space<vmem>>, vector<8x512xf32>,
    return
  }
}

module attributes {stable_mosaic.version = 11 : i64} {
  func.func @_fused_conv_kernel(%arg0: memref<3x144xbf16, #tpu.memory_space<vmem>>, %arg1: memref<144x512xbf16, #tpu.memory_space<vmem>>, %arg2: memref<3x1xf32, #tpu.memory_space<vmem>>, %arg3: memref<3x512xf32, #tpu.memory_space<vmem>>) attributes {dimension_semantics = [], scalar_prefetch = 0 : i64, scratch_operands = 0 : i64, tpu.core_type = #tpu.core_type<tc>} {
    %c0 = arith.constant 0 : index
    %c0_0 = arith.constant 0 : index
    %0 = vector.load %arg0[%c0, %c0_0] : memref<3x144xbf16, #tpu.memory_space<vmem>>, vector<3x144xbf16>
    %c0_1 = arith.constant 0 : index
    %c0_2 = arith.constant 0 : index
    %1 = vector.load %arg1[%c0_1, %c0_2] : memref<144x512xbf16, #tpu.memory_space<vmem>>, vector<144x512xbf16>
    %cst = arith.constant dense<0.000000e+00> : vector<3x512xf32>
    %2 = tpu.matmul %0, %1, %cst {dimension_numbers = #tpu.dot_dimension_numbers<[1], [0], [0], [1], [0, 0, 1, 1], [], []>} : vector<3x144xbf16>, vector<144x512xbf16>, vector<3x512xf32> -> vector<3x512xf32>
    %c0_3 = arith.constant 0 : index
    %c0_4 = arith.constant 0 : index
    %3 = vector.load %arg2[%c0_3, %c0_4] : memref<3x1xf32, #tpu.memory_space<vmem>>, vector<3x1xf32>
    %4 = vector.broadcast %3 : vector<3x1xf32> to vector<3x512xf32>
    %5 = arith.addf %2, %4 : vector<3x512xf32>
    %c0_5 = arith.constant 0 : index
    %c0_6 = arith.constant 0 : index
    %6 = vector.load %arg3[%c0_5, %c0_6] : memref<3x512xf32, #tpu.memory_space<vmem>>, vector<3x512xf32>
    tpu.vector_store %arg3[%c0_5, %c0_6], %5 {strides = array<i32>} : memref<3x512xf32, #tpu.memory_space<vmem>>, vector<3x512xf32>,
    return
  }
}

</mosaic_0001>

<bundles_post_ra>
// kernel: _lambda_.10
= control target key start
LH: loop header
LB: loop body
LE: loop exit
PB: predicated region body
PF: predicated region fallthrough
CT: control target
= control target key end

     0   :  { %vm67_vm0 = vcmask 1044480   ;;  %vm68_vm1 = vcmask 1045504   ;;  %v257_v2 = vmov 65535   ;;  %vm63_vm2 = vcmask 220160   ;;  %s353_s1 = inlined_call_operand.vmem [shape: bf16[27,512], index: 1, kind: input, shape index: {}]   ;;  %s354_s0 = inlined_call_operand.vmem [shape: bf16[8,27], index: 0, kind: input, shape index: {}]   ;;  %s355_s2 = inlined_call_operand.vmem [shape: f32[8,1], index: 2, kind: input, shape index: {}]   ;;  %s356_s3 = inlined_call_operand.vmem [shape: f32[8,1], index: 3, kind: input, shape index: {}]   ;;  %s357_s4 = inlined_call_operand.vmem [shape: f32[8,512], index: 4, kind: output, shape index: {}]  }
   0x1   :  { %v225_v0 = vld [vmem:[%s353_s1 + $0x20] sm:$0xf]  ;;  %v249_v1 = vld [vmem:[%s353_s1 + $0x2c] sm:$0x30]  ;;  %v69_v3 = vsel %vm67_vm0, 4294967295, %v257_v2  ;;  %v258_v56 = vmov 0  }
   0x2   :  { %v226_v4 = vor.u32 %v249_v1, %v225_v0  ;;  %v70_v5 = vsel %vm68_vm1, %v69_v3, 0  ;;  %v247_v6 = vld [vmem:[%s353_s1 + $0x24] sm:$0xf]  ;;  %v227_v7 = vld [vmem:[%s353_s1 + $0x30] sm:$0x30]  ;;  %253 = vset.pattern.permute.xlu1 %v258_v56  ;;  %254 = vset.pattern.permute.xlu0 %v258_v56 }
   0x3   :  { %v230_v8 = vor.u32 %v247_v6, %v227_v7  ;;  %v233_v9 = vld [vmem:[%s353_s1 + $0x28] sm:$0xf]  ;;  %v250_v10 = vld [vmem:[%s353_s1 + $0x34] sm:$0x30]  ;;  %v248_v11 = vld [vmem:[%s353_s1 + $0x2c] sm:$0xf] }
   0x4   :  { %v72_v12 = vand.u32 %v226_v4, %v70_v5  ;;  %v234_v13 = vor.u32 %v250_v10, %v233_v9  ;;  %v235_v14 = vld [vmem:[%s353_s1 + $0x38] sm:$0x30]  ;;  %v209_v15 = vld [vmem:[%s353_s1] sm:$0xf]  ;;  %v245_v16 = vld [vmem:[%s353_s1 + $0xc] sm:$0xf0] }
   0x5   :  { %v75_v17 = vand.u32 %v230_v8, %v70_v5  ;;  %v238_v18 = vor.u32 %v248_v11, %v235_v14  ;;  %v243_v19 = vld [vmem:[%s353_s1 + $0x4] sm:$0xf]  ;;  %v211_v20 = vld [vmem:[%s353_s1 + $0x10] sm:$0xf0]  ;;  %v217_v21 = vld [vmem:[%s353_s1 + $0x8] sm:$0xf]  ;;  %v210_v23 = vor.u32 %v245_v16, %v209_v15 }
   0x6   :  { %89 = vmatpush.bf16.msra.mxu0 %v72_v12  ;;  %v78_v22 = vand.u32 %v234_v13, %v70_v5  ;;  %v246_v24 = vld [vmem:[%s353_s1 + $0x14] sm:$0xf0]  ;;  %v244_v25 = vld [vmem:[%s353_s1 + $0xc] sm:$0xf]  ;;  %v219_v26 = vld [vmem:[%s353_s1 + $0x18] sm:$0xf0]  ;;  %v214_v28 = vor.u32 %v243_v19, %v211_v20 }
   0x7   :  { %102 = vmatpush.bf16.msra.mxu1 %v75_v17  ;;  %v81_v27 = vand.u32 %v238_v18, %v70_v5  ;;  %v218_v29 = vor.u32 %v246_v24, %v217_v21  ;;  %v222_v30 = vor.u32 %v244_v25, %v219_v26  ;;  %v18_v31 = vld [vmem:[%s354_s0] sm:$0xf] }
   0x8   :  { %115 = vmatpush.bf16.msra.mxu2 %v78_v22  ;;  %v155_v1 = vld [vmem:[%s355_s2] sm:$0xff] }
   0x9   :  { %128 = vmatpush.bf16.msra.mxu3 %v81_v27  ;;  %v177_v5 = vld [vmem:[%s356_s3] sm:$0xff] }
   0xa   :  { %90 = vmatpush.bf16.msra.mxu0 %v210_v23 }
   0xb   :  { %103 = vmatpush.bf16.msra.mxu1 %v214_v28 }
   0xc   :  { %116 = vmatpush.bf16.msra.mxu2 %v218_v29 }
   0xd   :  { %129 = vmatpush.bf16.msra.mxu3 %v222_v30  ;;  %239 = vmatmul.msk.bf16.vlgmr.msra.gmra.mxu0 %vm63_vm2, %v18_v31 }
   0xe   :  { %240 = vmatmul.msk.bf16.vlgmr.msra.gmra.mxu1 %vm63_vm2, %v18_v31 }
   0xf   :  { %241 = vmatmul.msk.bf16.vlgmr.msra.gmra.mxu2 %vm63_vm2, %v18_v31 }
  0x10   :  { %242 = vmatmul.msk.bf16.vlgmr.msra.gmra.mxu3 %vm63_vm2, %v18_v31 }
  0x8a   :  { %v92_v32 = vpop.f32.mrf.mxu0 }
  0x8b   :  { %v105_v33 = vpop.f32.mrf.mxu1 }
  0x8c   :  { %v135_v34 = vadd.f32 %v105_v33, %v92_v32 }
  0x92   :  { %v118_v35 = vpop.f32.mrf.mxu2  ;;  %v94_v36 = vpop.f32.mrf.mxu0 }
  0x93   :  { %v136_v37 = vadd.f32 %v135_v34, %v118_v35  ;;  %v131_v38 = vpop.f32.mrf.mxu3  ;;  %v107_v39 = vpop.f32.mrf.mxu1 }
  0x95   :  { %v137_v40 = vadd.f32 %v136_v37, %v131_v38 }
  0x97   :  { %138 = vadd.xlane.f32.xlu0 %v137_v40 }
  0x9a   :  { %v120_v41 = vpop.f32.mrf.mxu2 }
  0x9b   :  { %v133_v42 = vpop.f32.mrf.mxu3 }
 0x10a   :  { %v139_v43 = vpop.xlane.xlu0 %138 }
 0x10b   :  { %v140_v44 = vmul.f32 0.001953125, %v139_v43 }
 0x10d   :  { %v141_v45 = vsub.f32 %v92_v32, %v140_v44  ;;  %v142_v46 = vsub.f32 %v105_v33, %v140_v44  ;;  %v143_v47 = vsub.f32 %v118_v35, %v140_v44  ;;  %v144_v48 = vsub.f32 %v131_v38, %v140_v44 }
 0x10f   :  { %v145_v49 = vmul.f32 %v141_v45, %v141_v45  ;;  %v146_v50 = vmul.f32 %v142_v46, %v142_v46  ;;  %v147_v51 = vmul.f32 %v143_v47, %v143_v47  ;;  %v148_v53 = vmul.f32 %v144_v48, %v144_v48 }
 0x111   :  { %v149_v52 = vadd.f32 %v146_v50, %v145_v49 }
 0x113   :  { %v150_v54 = vadd.f32 %v149_v52, %v147_v51 }
 0x115   :  { %v151_v55 = vadd.f32 %v150_v54, %v148_v53 }
 0x117   :  { %152 = vadd.xlane.f32.xlu0 %v151_v55 }
 0x18a   :  { %v153_v57 = vpop.xlane.xlu0 %152 }
 0x18b   :  { %v154_v58 = vmul.f32 0.001953125, %v153_v57 }
 0x18d   :  { %v156_v59 = vadd.f32 1e-05, %v154_v58 }
 0x18f   :  { %255 = vrsqrt.f32 %v156_v59  ;;  %vm163_vm4 = vweird.f32 %v156_v59 }
 0x195   :  { %v256_v60 = vpop.eup %255 }
 0x196   :  { %v158_v61 = vmul.f32 %v256_v60, %v156_v59  ;;  %vm164_vm3 = vweird.f32 %v256_v60 }
 0x197   :  { %vm165_vm5 = vmor %vm163_vm4, %vm164_vm3 }
 0x198   :  { %v159_v62 = vmul.f32 %v256_v60, %v158_v61 }
 0x19a   :  { %v160_v63 = vmul.f32 0.5, %v159_v62 }
 0x19c   :  { %v161_v0 = vsub.f32 1.5, %v160_v63 }
 0x19e   :  { %v162_v2 = vmul.f32 %v256_v60, %v161_v0 }
 0x1a0   :  { %v166_v3 = vsel %vm165_vm5, %v256_v60, %v162_v2 }
 0x1a1   :  { %v167_v4 = vmul.f32 %v166_v3, %v155_v1 }
 0x1a3   :  { %170 = vperm.xlu1 %253, %v167_v4  }
 0x1ab   :  { %180 = vperm.xlu1 %253, %v177_v5  }
 0x215   :  { %v171_v6 = vpop.permute.xlu1 %170 }
 0x216   :  { %v173_v7 = vmul.f32 %v171_v6, %v141_v45  ;;  %v174_v8 = vmul.f32 %v171_v6, %v142_v46  ;;  %v175_v9 = vmul.f32 %v171_v6, %v143_v47  ;;  %v176_v10 = vmul.f32 %v171_v6, %v144_v48 }
 0x21d   :  { %v181_v11 = vpop.permute.xlu1 %180 }
 0x21e   :  { %v183_v12 = vadd.f32 %v181_v11, %v173_v7  ;;  %v184_v13 = vadd.f32 %v181_v11, %v174_v8  ;;  %v185_v14 = vadd.f32 %v181_v11, %v175_v9  ;;  %v186_v15 = vadd.f32 %v181_v11, %v176_v10 }
 0x220   :  { %vm187_vm6 = vcmp.ge.f32.partialorder %v183_v12, 0.0  ;;  %vm188_vm7 = vcmp.ge.f32.partialorder %v184_v13, 0.0  ;;  %vm189_vm8 = vcmp.ge.f32.partialorder %v185_v14, 0.0  ;;  %vm190_vm9 = vcmp.ge.f32.partialorder %v186_v15, 0.0 }
 0x221   :  { %v191_v16 = vmul.f32 0.2, %v183_v12  ;;  %v192_v17 = vmul.f32 0.2, %v184_v13  ;;  %v193_v18 = vmul.f32 0.2, %v185_v14 }
 0x222   :  { %v194_v19 = vmul.f32 0.2, %v186_v15 }
 0x223   :  { %v195_v20 = vsel %vm187_vm6, %v183_v12, %v191_v16  ;;  %v196_v21 = vsel %vm188_vm7, %v184_v13, %v192_v17  ;;  %v197_v22 = vsel %vm189_vm8, %v185_v14, %v193_v18 }
 0x224   :  { %v198_v23 = vsel %vm190_vm9, %v186_v15, %v194_v19  ;;  %199 = vst [vmem:[%s357_s4] sm:$0xff] %v195_v20 }
 0x225   :  { %200 = vst [vmem:[%s357_s4 + $0x8] sm:$0xff] %v196_v21 }
 0x226   :  { %201 = vst [vmem:[%s357_s4 + $0x10] sm:$0xff] %v197_v22 }
 0x227   :  { %202 = vst [vmem:[%s357_s4 + $0x18] sm:$0xff] %v198_v23 }

// kernel: _lambda_.11
= control target key start
LH: loop header
LB: loop body
LE: loop exit
PB: predicated region body
PF: predicated region fallthrough
CT: control target
= control target key end

     0   :  { %vm131_vm0 = vcmask 1043456   ;;  %vm127_vm1 = vcmask 588800   ;;  %s510_s1 = inlined_call_operand.vmem [shape: bf16[72,512], index: 1, kind: input, shape index: {}]   ;;  %s511_s0 = inlined_call_operand.vmem [shape: bf16[8,72], index: 0, kind: input, shape index: {}]   ;;  %s512_s2 = inlined_call_operand.vmem [shape: f32[8,1], index: 2, kind: input, shape index: {}]   ;;  %s513_s3 = inlined_call_operand.vmem [shape: f32[8,1], index: 3, kind: input, shape index: {}]   ;;  %s514_s4 = inlined_call_operand.vmem [shape: f32[8,512], index: 4, kind: output, shape index: {}]  }
   0x1   :  { %v35_v0 = vld [vmem:[%s510_s1 + $0x80] sm:$0xff]  ;;  %v36_v1 = vld [vmem:[%s510_s1 + $0x88] sm:$0xff]  ;;  %v350_v7 = vld [vmem:[%s510_s1 + $0x6c] sm:$0xf0] }
   0x2   :  { %v87_v2 = vunpack.c.l.b16 %v35_v0  ;;  %v88_v3 = vunpack.c.h.b16 %v35_v0  ;;  %v89_v4 = vunpack.c.l.b16 %v36_v1  ;;  %v90_v5 = vunpack.c.h.b16 %v36_v1  ;;  %v318_v6 = vld [vmem:[%s510_s1 + $0x60] sm:$0xf]  ;;  %v348_v12 = vld [vmem:[%s510_s1 + $0x64] sm:$0xf]  ;;  %v320_v13 = vld [vmem:[%s510_s1 + $0x70] sm:$0xf0] }
   0x3   :  { %v326_v14 = vld [vmem:[%s510_s1 + $0x68] sm:$0xf]  ;;  %v351_v15 = vld [vmem:[%s510_s1 + $0x74] sm:$0xf0]  ;;  %v349_v16 = vld [vmem:[%s510_s1 + $0x6c] sm:$0xf]  ;;  %v319_v22 = vor.u32 %v350_v7, %v318_v6  ;;  %v323_v23 = vor.u32 %v348_v12, %v320_v13 }
   0x4   :  { %v107_v8 = vpack.c.b16 %v87_v2, %v87_v2  ;;  %v108_v9 = vpack.c.b16 %v88_v3, %v88_v3  ;;  %v109_v10 = vpack.c.b16 %v89_v4, %v89_v4  ;;  %v110_v11 = vpack.c.b16 %v90_v5, %v90_v5  ;;  %v328_v17 = vld [vmem:[%s510_s1 + $0x78] sm:$0xf0]  ;;  %v302_v24 = vld [vmem:[%s510_s1 + $0x40] sm:$0xf]  ;;  %v346_v25 = vld [vmem:[%s510_s1 + $0x4c] sm:$0xf0] }
   0x5   :  { %v327_v26 = vor.u32 %v351_v15, %v326_v14  ;;  %v331_v27 = vor.u32 %v349_v16, %v328_v17  ;;  %v344_v28 = vld [vmem:[%s510_s1 + $0x44] sm:$0xf]  ;;  %v304_v29 = vld [vmem:[%s510_s1 + $0x50] sm:$0xf0]  ;;  %v310_v30 = vld [vmem:[%s510_s1 + $0x48] sm:$0xf]  ;;  %v303_v34 = vor.u32 %v346_v25, %v302_v24 }
   0x6   :  { %v133_v18 = vsel %vm131_vm0, %v107_v8, 0  ;;  %v136_v19 = vsel %vm131_vm0, %v108_v9, 0  ;;  %v139_v20 = vsel %vm131_vm0, %v109_v10, 0  ;;  %v142_v21 = vsel %vm131_vm0, %v110_v11, 0  ;;  %v347_v31 = vld [vmem:[%s510_s1 + $0x54] sm:$0xf0] }
   0x7   :  { %147 = vmatpush.bf16.msra.mxu0 %v133_v18  ;;  %160 = vmatpush.bf16.msra.mxu1 %v136_v19  ;;  %v345_v32 = vld [vmem:[%s510_s1 + $0x4c] sm:$0xf]  ;;  %v312_v33 = vld [vmem:[%s510_s1 + $0x58] sm:$0xf0]  ;;  %v307_v35 = vor.u32 %v344_v28, %v304_v29  ;;  %v286_v36 = vld [vmem:[%s510_s1 + $0x20] sm:$0xf]  ;;  %v311_v38 = vor.u32 %v347_v31, %v310_v30 }
   0x8   :  { %173 = vmatpush.bf16.msra.mxu2 %v139_v20  ;;  %186 = vmatpush.bf16.msra.mxu3 %v142_v21  ;;  %v342_v37 = vld [vmem:[%s510_s1 + $0x2c] sm:$0xf0]  ;;  %v315_v39 = vor.u32 %v345_v32, %v312_v33  ;;  %v340_v40 = vld [vmem:[%s510_s1 + $0x24] sm:$0xf]  ;;  %v288_v41 = vld [vmem:[%s510_s1 + $0x30] sm:$0xf0] }
   0x9   :  { %v294_v42 = vld [vmem:[%s510_s1 + $0x28] sm:$0xf]  ;;  %v343_v43 = vld [vmem:[%s510_s1 + $0x34] sm:$0xf0]  ;;  %v341_v44 = vld [vmem:[%s510_s1 + $0x2c] sm:$0xf]  ;;  %v287_v46 = vor.u32 %v342_v37, %v286_v36  ;;  %v291_v47 = vor.u32 %v340_v40, %v288_v41 }
   0xa   :  { %v296_v45 = vld [vmem:[%s510_s1 + $0x38] sm:$0xf0]  ;;  %v270_v48 = vld [vmem:[%s510_s1] sm:$0xf]  ;;  %v338_v49 = vld [vmem:[%s510_s1 + $0xc] sm:$0xf0]  ;;  %v295_v50 = vor.u32 %v343_v43, %v294_v42 }
   0xb   :  { %148 = vmatpush.bf16.msra.mxu0 %v319_v22  ;;  %161 = vmatpush.bf16.msra.mxu1 %v323_v23  ;;  %v299_v51 = vor.u32 %v341_v44, %v296_v45  ;;  %v336_v52 = vld [vmem:[%s510_s1 + $0x4] sm:$0xf]  ;;  %v272_v53 = vld [vmem:[%s510_s1 + $0x10] sm:$0xf0]  ;;  %v278_v54 = vld [vmem:[%s510_s1 + $0x8] sm:$0xf]  ;;  %v271_v58 = vor.u32 %v338_v49, %v270_v48 }
   0xc   :  { %174 = vmatpush.bf16.msra.mxu2 %v327_v26  ;;  %187 = vmatpush.bf16.msra.mxu3 %v331_v27  ;;  %v339_v55 = vld [vmem:[%s510_s1 + $0x14] sm:$0xf0]  ;;  %v337_v56 = vld [vmem:[%s510_s1 + $0xc] sm:$0xf]  ;;  %v280_v57 = vld [vmem:[%s510_s1 + $0x18] sm:$0xf0]  ;;  %v275_v59 = vor.u32 %v336_v52, %v272_v53 }
   0xd   :  { %v279_v60 = vor.u32 %v339_v55, %v278_v54  ;;  %v283_v61 = vor.u32 %v337_v56, %v280_v57  ;;  %v18_v62 = vld [vmem:[%s511_s0] sm:$0xf]  ;;  %v357_v23 = vmov 0  }
   0xe   :  { %353 = vset.pattern.permute.xlu1 %v357_v23  ;;  %354 = vset.pattern.permute.xlu0 %v357_v23  ;;  %v216_v32 = vld [vmem:[%s512_s2] sm:$0xff] }
   0xf   :  { %149 = vmatpush.bf16.msra.mxu0 %v303_v34  ;;  %162 = vmatpush.bf16.msra.mxu1 %v307_v35  ;;  %v238_v36 = vld [vmem:[%s513_s3] sm:$0xff] }
  0x10   :  { %175 = vmatpush.bf16.msra.mxu2 %v311_v38  ;;  %188 = vmatpush.bf16.msra.mxu3 %v315_v39 }
  0x13   :  { %150 = vmatpush.bf16.msra.mxu0 %v287_v46  ;;  %163 = vmatpush.bf16.msra.mxu1 %v291_v47 }
  0x14   :  { %176 = vmatpush.bf16.msra.mxu2 %v295_v50  ;;  %189 = vmatpush.bf16.msra.mxu3 %v299_v51 }
  0x17   :  { %151 = vmatpush.bf16.msra.mxu0 %v271_v58  ;;  %164 = vmatpush.bf16.msra.mxu1 %v275_v59 }
  0x18   :  { %177 = vmatpush.bf16.msra.mxu2 %v279_v60  ;;  %190 = vmatpush.bf16.msra.mxu3 %v283_v61 }
  0x1a   :  { %332 = vmatmul.msk.bf16.vlgmr.msra.gmra.mxu0 %vm127_vm1, %v18_v62  ;;  %333 = vmatmul.msk.bf16.vlgmr.msra.gmra.mxu1 %vm127_vm1, %v18_v62 }
  0x1b   :  { %334 = vmatmul.msk.bf16.vlgmr.msra.gmra.mxu2 %vm127_vm1, %v18_v62  ;;  %335 = vmatmul.msk.bf16.vlgmr.msra.gmra.mxu3 %vm127_vm1, %v18_v62 }
  0x97   :  { %v153_v63 = vpop.f32.mrf.mxu0  ;;  %v166_v0 = vpop.f32.mrf.mxu1 }
  0x98   :  { %v196_v1 = vadd.f32 %v166_v0, %v153_v63 }
  0x9e   :  { %v179_v2 = vpop.f32.mrf.mxu2  ;;  %v192_v3 = vpop.f32.mrf.mxu3 }
  0x9f   :  { %v197_v4 = vadd.f32 %v196_v1, %v179_v2  ;;  %v155_v5 = vpop.f32.mrf.mxu0  ;;  %v168_v6 = vpop.f32.mrf.mxu1 }
  0xa1   :  { %v198_v7 = vadd.f32 %v197_v4, %v192_v3 }
  0xa3   :  { %199 = vadd.xlane.f32.xlu0 %v198_v7 }
  0xa6   :  { %v181_v8 = vpop.f32.mrf.mxu2  ;;  %v194_v9 = vpop.f32.mrf.mxu3 }
 0x116   :  { %v200_v10 = vpop.xlane.xlu0 %199 }
 0x117   :  { %v201_v11 = vmul.f32 0.001953125, %v200_v10 }
 0x119   :  { %v202_v12 = vsub.f32 %v153_v63, %v201_v11  ;;  %v203_v13 = vsub.f32 %v166_v0, %v201_v11  ;;  %v204_v14 = vsub.f32 %v179_v2, %v201_v11  ;;  %v205_v15 = vsub.f32 %v192_v3, %v201_v11 }
 0x11b   :  { %v206_v16 = vmul.f32 %v202_v12, %v202_v12  ;;  %v207_v17 = vmul.f32 %v203_v13, %v203_v13  ;;  %v208_v18 = vmul.f32 %v204_v14, %v204_v14  ;;  %v209_v20 = vmul.f32 %v205_v15, %v205_v15 }
 0x11d   :  { %v210_v19 = vadd.f32 %v207_v17, %v206_v16 }
 0x11f   :  { %v211_v21 = vadd.f32 %v210_v19, %v208_v18 }
 0x121   :  { %v212_v22 = vadd.f32 %v211_v21, %v209_v20 }
 0x123   :  { %213 = vadd.xlane.f32.xlu0 %v212_v22 }
 0x196   :  { %v214_v24 = vpop.xlane.xlu0 %213 }
 0x197   :  { %v215_v25 = vmul.f32 0.001953125, %v214_v24 }
 0x199   :  { %v217_v26 = vadd.f32 1e-05, %v215_v25 }
 0x19b   :  { %355 = vrsqrt.f32 %v217_v26  ;;  %vm224_vm3 = vweird.f32 %v217_v26 }
 0x1a1   :  { %v356_v27 = vpop.eup %355 }
 0x1a2   :  { %v219_v28 = vmul.f32 %v356_v27, %v217_v26  ;;  %vm225_vm2 = vweird.f32 %v356_v27 }
 0x1a3   :  { %vm226_vm4 = vmor %vm224_vm3, %vm225_vm2 }
 0x1a4   :  { %v220_v29 = vmul.f32 %v356_v27, %v219_v28 }
 0x1a6   :  { %v221_v30 = vmul.f32 0.5, %v220_v29 }
 0x1a8   :  { %v222_v31 = vsub.f32 1.5, %v221_v30 }
 0x1aa   :  { %v223_v33 = vmul.f32 %v356_v27, %v222_v31 }
 0x1ac   :  { %v227_v34 = vsel %vm226_vm4, %v356_v27, %v223_v33 }
 0x1ad   :  { %v228_v35 = vmul.f32 %v227_v34, %v216_v32 }
 0x1af   :  { %231 = vperm.xlu1 %353, %v228_v35  }
 0x1b7   :  { %241 = vperm.xlu1 %353, %v238_v36  }
 0x221   :  { %v232_v37 = vpop.permute.xlu1 %231 }
 0x222   :  { %v234_v38 = vmul.f32 %v232_v37, %v202_v12  ;;  %v235_v39 = vmul.f32 %v232_v37, %v203_v13  ;;  %v236_v40 = vmul.f32 %v232_v37, %v204_v14  ;;  %v237_v41 = vmul.f32 %v232_v37, %v205_v15 }
 0x229   :  { %v242_v42 = vpop.permute.xlu1 %241 }
 0x22a   :  { %v244_v43 = vadd.f32 %v242_v42, %v234_v38  ;;  %v245_v44 = vadd.f32 %v242_v42, %v235_v39  ;;  %v246_v45 = vadd.f32 %v242_v42, %v236_v40  ;;  %v247_v46 = vadd.f32 %v242_v42, %v237_v41 }
 0x22c   :  { %vm248_vm5 = vcmp.ge.f32.partialorder %v244_v43, 0.0  ;;  %vm249_vm6 = vcmp.ge.f32.partialorder %v245_v44, 0.0  ;;  %vm250_vm7 = vcmp.ge.f32.partialorder %v246_v45, 0.0  ;;  %vm251_vm8 = vcmp.ge.f32.partialorder %v247_v46, 0.0 }
 0x22d   :  { %v252_v47 = vmul.f32 0.2, %v244_v43  ;;  %v253_v48 = vmul.f32 0.2, %v245_v44  ;;  %v254_v49 = vmul.f32 0.2, %v246_v45 }
 0x22e   :  { %v255_v50 = vmul.f32 0.2, %v247_v46 }
 0x22f   :  { %v256_v51 = vsel %vm248_vm5, %v244_v43, %v252_v47  ;;  %v257_v52 = vsel %vm249_vm6, %v245_v44, %v253_v48  ;;  %v258_v53 = vsel %vm250_vm7, %v246_v45, %v254_v49 }
 0x230   :  { %v259_v54 = vsel %vm251_vm8, %v247_v46, %v255_v50  ;;  %260 = vst [vmem:[%s514_s4] sm:$0xff] %v256_v51 }
 0x231   :  { %261 = vst [vmem:[%s514_s4 + $0x8] sm:$0xff] %v257_v52 }
 0x232   :  { %262 = vst [vmem:[%s514_s4 + $0x10] sm:$0xff] %v258_v53 }
 0x233   :  { %263 = vst [vmem:[%s514_s4 + $0x18] sm:$0xff] %v259_v54 }

// kernel: _lambda_.12
= control target key start
LH: loop header
LB: loop body
LE: loop exit
PB: predicated region body
PF: predicated region fallthrough
CT: control target
= control target key end

     0   :  { %v236_v19 = vmov 0   ;;  %s307_s1 = inlined_call_operand.vmem [shape: bf16[128,128], index: 1, kind: input, shape index: {}]   ;;  %s308_s0 = inlined_call_operand.vmem [shape: bf16[16,128], index: 0, kind: input, shape index: {}]   ;;  %s309_s3 = inlined_call_operand.vmem [shape: f32[16,1], index: 3, kind: input, shape index: {}]   ;;  %s310_s2 = inlined_call_operand.vmem [shape: f32[16,1], index: 2, kind: input, shape index: {}]   ;;  %s311_s4 = inlined_call_operand.vmem [shape: f32[16,128], index: 4, kind: output, shape index: {}]  }
   0x1   :  { %v227_v0 = vld [vmem:[%s307_s1 + $0x38] sm:$0xff]  ;;  %v226_v1 = vld [vmem:[%s307_s1 + $0x30] sm:$0xff]  ;;  %v225_v2 = vld [vmem:[%s307_s1 + $0x28] sm:$0xff]  ;;  %230 = vset.pattern.permute.xlu0 %v236_v19  ;;  %231 = vset.pattern.permute.xlu1 %v236_v19 }
   0x2   :  { %89 = vmatpush.bf16.msra.mxu0 %v227_v0  ;;  %v224_v3 = vld [vmem:[%s307_s1 + $0x20] sm:$0xff]  ;;  %v223_v4 = vld [vmem:[%s307_s1 + $0x18] sm:$0xff]  ;;  %v222_v5 = vld [vmem:[%s307_s1 + $0x10] sm:$0xff]  ;;  %229 = vset.pattern.permute.xlu2 %v236_v19 }
   0x3   :  { %v221_v6 = vld [vmem:[%s307_s1 + $0x8] sm:$0xff]  ;;  %v220_v7 = vld [vmem:[%s307_s1] sm:$0xff] }
   0x4   :  { %v219_v8 = vld [vmem:[%s308_s0] sm:$0xff]  ;;  %v158_v21 = vld [vmem:[%s309_s3 + $0x8] sm:$0xff] }
   0x5   :  { %v157_v20 = vld [vmem:[%s309_s3] sm:$0xff]  ;;  %v120_v42 = vld [vmem:[%s310_s2 + $0x8] sm:$0xff] }
   0x6   :  { %90 = vmatpush.bf16.msra.mxu0 %v226_v1  ;;  %v119_v35 = vld [vmem:[%s310_s2] sm:$0xff] }
   0xa   :  { %91 = vmatpush.bf16.msra.mxu0 %v225_v2 }
   0xe   :  { %92 = vmatpush.bf16.msra.mxu0 %v224_v3 }
  0x12   :  { %93 = vmatpush.bf16.msra.mxu0 %v223_v4 }
  0x16   :  { %94 = vmatpush.bf16.msra.mxu0 %v222_v5 }
  0x1a   :  { %95 = vmatpush.bf16.msra.mxu0 %v221_v6 }
  0x1e   :  { %96 = vmatpush.bf16.msra.mxu0 %v220_v7 }
  0x21   :  { %97 = vmatmul.bf16.vlgmr.msra.gmra.mxu0 %v219_v8 }
  0x9e   :  { %v98_v9 = vpop.f32.mrf.mxu0 }
  0x9f   :  { %103 = vadd.xlane.f32.xlu0 %v98_v9 }
  0xa6   :  { %v100_v10 = vpop.f32.mrf.mxu0 }
  0xa7   :  { %105 = vadd.xlane.f32.xlu0 %v100_v10 }
  0xbb   :  { %161 = vperm.xlu0 %230, %v157_v20  }
 0x112   :  { %v104_v11 = vpop.xlane.xlu0 %103 }
 0x113   :  { %v107_v12 = vmul.f32 0.0078125, %v104_v11 }
 0x115   :  { %v109_v13 = vsub.f32 %v98_v9, %v107_v12 }
 0x117   :  { %v111_v14 = vmul.f32 %v109_v13, %v109_v13 }
 0x119   :  { %113 = vadd.xlane.f32.xlu1 %v111_v14 }
 0x11a   :  { %v106_v15 = vpop.xlane.xlu0 %105 }
 0x11b   :  { %v108_v16 = vmul.f32 0.0078125, %v106_v15 }
 0x11d   :  { %v110_v17 = vsub.f32 %v100_v10, %v108_v16 }
 0x11f   :  { %v112_v18 = vmul.f32 %v110_v17, %v110_v17 }
 0x121   :  { %115 = vadd.xlane.f32.xlu1 %v112_v18 }
 0x12d   :  { %v162_v47 = vpop.permute.xlu0 %161 }
 0x13a   :  { %166 = vperm.xlu1 %231, %v158_v21  }
 0x18c   :  { %v114_v22 = vpop.xlane.xlu1 %113 }
 0x18d   :  { %v117_v23 = vmul.f32 0.0078125, %v114_v22 }
 0x18f   :  { %v121_v24 = vadd.f32 1e-05, %v117_v23 }
 0x191   :  { %232 = vrsqrt.f32 %v121_v24  ;;  %vm129_vm1 = vweird.f32 %v121_v24 }
 0x194   :  { %v116_v25 = vpop.xlane.xlu1 %115 }
 0x195   :  { %v118_v26 = vmul.f32 0.0078125, %v116_v25 }
 0x197   :  { %v233_v27 = vpop.eup %232  ;;  %v122_v28 = vadd.f32 1e-05, %v118_v26 }
 0x198   :  { %v124_v29 = vmul.f32 %v233_v27, %v121_v24  ;;  %vm130_vm0 = vweird.f32 %v233_v27 }
 0x199   :  { %234 = vrsqrt.f32 %v122_v28  ;;  %vm131_vm2 = vmor %vm129_vm1, %vm130_vm0  ;;  %vm139_vm4 = vweird.f32 %v122_v28 }
 0x19a   :  { %v125_v30 = vmul.f32 %v233_v27, %v124_v29 }
 0x19c   :  { %v126_v31 = vmul.f32 0.5, %v125_v30 }
 0x19e   :  { %v127_v32 = vsub.f32 1.5, %v126_v31 }
 0x19f   :  { %v235_v33 = vpop.eup %234 }
 0x1a0   :  { %v134_v34 = vmul.f32 %v235_v33, %v122_v28  ;;  %v128_v36 = vmul.f32 %v233_v27, %v127_v32  ;;  %vm140_vm3 = vweird.f32 %v235_v33 }
 0x1a1   :  { %vm141_vm5 = vmor %vm139_vm4, %vm140_vm3 }
 0x1a2   :  { %v135_v37 = vmul.f32 %v235_v33, %v134_v34  ;;  %v132_v38 = vsel %vm131_vm2, %v233_v27, %v128_v36 }
 0x1a3   :  { %v143_v39 = vmul.f32 %v132_v38, %v119_v35 }
 0x1a4   :  { %v136_v40 = vmul.f32 0.5, %v135_v37 }
 0x1a5   :  { %147 = vperm.xlu2 %229, %v143_v39  }
 0x1a6   :  { %v137_v41 = vsub.f32 1.5, %v136_v40 }
 0x1a8   :  { %v138_v43 = vmul.f32 %v235_v33, %v137_v41 }
 0x1aa   :  { %v142_v44 = vsel %vm141_vm5, %v235_v33, %v138_v43 }
 0x1ab   :  { %v144_v45 = vmul.f32 %v142_v44, %v120_v42 }
 0x1ac   :  { %v167_v53 = vpop.permute.xlu1 %166 }
 0x1ad   :  { %152 = vperm.xlu2 %229, %v144_v45  }
 0x1ff   :  { %v148_v46 = vpop.permute.xlu2 %147 }
 0x200   :  { %v155_v48 = vmul.f32 %v148_v46, %v109_v13 }
 0x202   :  { %v169_v49 = vadd.f32 %v162_v47, %v155_v48 }
 0x204   :  { %vm171_vm6 = vcmp.ge.f32.partialorder %v169_v49, 0.0  ;;  %v173_v50 = vmul.f32 0.2, %v169_v49 }
 0x206   :  { %v175_v51 = vsel %vm171_vm6, %v169_v49, %v173_v50 }
 0x207   :  { %177 = vst [vmem:[%s311_s4] sm:$0xff] %v175_v51  ;;  %v153_v52 = vpop.permute.xlu2 %152 }
 0x208   :  { %v156_v54 = vmul.f32 %v153_v52, %v110_v17 }
 0x20a   :  { %v170_v55 = vadd.f32 %v167_v53, %v156_v54 }
 0x20c   :  { %vm172_vm7 = vcmp.ge.f32.partialorder %v170_v55, 0.0  ;;  %v174_v56 = vmul.f32 0.2, %v170_v55 }
 0x20e   :  { %v176_v57 = vsel %vm172_vm7, %v170_v55, %v174_v56 }
 0x20f   :  { %178 = vst [vmem:[%s311_s4 + $0x8] sm:$0xff] %v176_v57 }

// kernel: _lambda_.13
= control target key start
LH: loop header
LB: loop body
LE: loop exit
PB: predicated region body
PF: predicated region fallthrough
CT: control target
= control target key end

     0   :  { %v212_v4 = vmov 0   ;;  %vm110_vm0 = vcmask 130048   ;;  %s284_s1 = inlined_call_operand.vmem [shape: bf16[144,128], index: 1, kind: input, shape index: {}]   ;;  %s285_s0 = inlined_call_operand.vmem [shape: bf16[16,144], index: 0, kind: input, shape index: {}]   ;;  %s286_s2 = inlined_call_operand.vmem [shape: f32[16,1], index: 2, kind: input, shape index: {}]   ;;  %s287_s3 = inlined_call_operand.vmem [shape: f32[16,128], index: 3, kind: output, shape index: {}]  }
   0x1   :  { %v208_v0 = vld [vmem:[%s284_s1 + $0x38] sm:$0xff]  ;;  %v207_v1 = vld [vmem:[%s284_s1 + $0x30] sm:$0xff]  ;;  %v209_v2 = vld [vmem:[%s284_s1 + $0x40] sm:$0xff]  ;;  %211 = vset.pattern.permute.xlu0 %v212_v4 }
   0x2   :  { %114 = vmatpush.bf16.msra.mxu0 %v208_v0  ;;  %v199_v3 = vld [vmem:[%s285_s0 + $0x4] sm:$0xf]  ;;  %v158_v5 = vld [vmem:[%s285_s0 + $0x8] sm:$0xf0]  ;;  %135 = vmatpush.bf16.msra.mxu1 %v209_v2  ;;  %v204_v11 = vld [vmem:[%s284_s1 + $0x18] sm:$0xff] }
   0x3   :  { %v161_v6 = vor.u32 %v199_v3, %v158_v5  ;;  %v35_v7 = vld [vmem:[%s286_s2] sm:$0xff]  ;;  %v206_v8 = vld [vmem:[%s284_s1 + $0x28] sm:$0xff]  ;;  %v203_v12 = vld [vmem:[%s284_s1 + $0x10] sm:$0xff] }
   0x4   :  { %39 = vperm.xlu0 %211, %v35_v7   ;;  %v205_v9 = vld [vmem:[%s284_s1 + $0x20] sm:$0xff]  ;;  %v36_v10 = vld [vmem:[%s286_s2 + $0x8] sm:$0xff] }
   0x5   :  { %198 = vmatmul.msk.bf16.vlgmr.msra.gmra.mxu1 %vm110_vm0, %v161_v6  ;;  %v202_v13 = vld [vmem:[%s284_s1 + $0x8] sm:$0xff]  ;;  %v201_v14 = vld [vmem:[%s284_s1] sm:$0xff] }
   0x6   :  { %115 = vmatpush.bf16.msra.mxu0 %v207_v1  ;;  %v156_v15 = vld [vmem:[%s285_s0] sm:$0xf]  ;;  %v200_v16 = vld [vmem:[%s285_s0 + $0x4] sm:$0xf0] }
   0x7   :  { %v157_v17 = vor.u32 %v200_v16, %v156_v15 }
   0xa   :  { %116 = vmatpush.bf16.msra.mxu0 %v206_v8 }
   0xc   :  { %44 = vperm.xlu0 %211, %v36_v10  }
   0xe   :  { %117 = vmatpush.bf16.msra.mxu0 %v205_v9 }
  0x12   :  { %118 = vmatpush.bf16.msra.mxu0 %v204_v11 }
  0x16   :  { %119 = vmatpush.bf16.msra.mxu0 %v203_v12 }
  0x1a   :  { %120 = vmatpush.bf16.msra.mxu0 %v202_v13 }
  0x1e   :  { %121 = vmatpush.bf16.msra.mxu0 %v201_v14 }
  0x21   :  { %122 = vmatmul.bf16.vlgmr.msra.gmra.mxu0 %v157_v17 }
  0x76   :  { %v40_v18 = vpop.permute.xlu0 %39 }
  0x7e   :  { %v45_v25 = vpop.permute.xlu0 %44 }
  0x82   :  { %v137_v19 = vpop.f32.mrf.mxu1 }
  0x8a   :  { %v139_v28 = vpop.f32.mrf.mxu1 }
  0x9e   :  { %v123_v20 = vpop.f32.mrf.mxu0 }
  0x9f   :  { %v124_v21 = vadd.f32 %v123_v20, %v40_v18 }
  0xa1   :  { %v138_v22 = vadd.f32 %v137_v19, %v124_v21 }
  0xa3   :  { %vm142_vm1 = vcmp.ge.f32.partialorder %v138_v22, 0.0  ;;  %v144_v23 = vmul.f32 0.2, %v138_v22 }
  0xa5   :  { %v146_v24 = vsel %vm142_vm1, %v138_v22, %v144_v23 }
  0xa6   :  { %148 = vst [vmem:[%s287_s3] sm:$0xff] %v146_v24  ;;  %v125_v26 = vpop.f32.mrf.mxu0 }
  0xa7   :  { %v126_v27 = vadd.f32 %v125_v26, %v45_v25 }
  0xa9   :  { %v140_v29 = vadd.f32 %v139_v28, %v126_v27 }
  0xab   :  { %vm143_vm2 = vcmp.ge.f32.partialorder %v140_v29, 0.0  ;;  %v145_v30 = vmul.f32 0.2, %v140_v29 }
  0xad   :  { %v147_v31 = vsel %vm143_vm2, %v140_v29, %v145_v30 }
  0xae   :  { %149 = vst [vmem:[%s287_s3 + $0x8] sm:$0xff] %v147_v31 }

// kernel: _lambda_.14
= control target key start
LH: loop header
LB: loop body
LE: loop exit
PB: predicated region body
PF: predicated region fallthrough
CT: control target
= control target key end

     0   :  { %v299_v4 = vmov 0   ;;  %vm200_vm1 = vcmask 261120   ;;  %s392_s1 = inlined_call_operand.vmem [shape: bf16[256,32], index: 1, kind: input, shape index: {}]   ;;  %s393_s2 = inlined_call_operand.vmem [shape: f32[16,1], index: 2, kind: input, shape index: {}]   ;;  %s394_s0 = inlined_call_operand.vmem [shape: bf16[16,256], index: 0, kind: input, shape index: {}]   ;;  %s395_s3 = inlined_call_operand.vmem [shape: f32[16,32], index: 3, kind: output, shape index: {}]  }
   0x1   :  { %v288_v0 = vld [vmem:[%s392_s1 + $0x38] sm:$0xff]  ;;  %v287_v2 = vld [vmem:[%s392_s1 + $0x30] sm:$0xff]  ;;  %298 = vset.pattern.permute.xlu0 %v299_v4  ;;  %v286_v5 = vld [vmem:[%s392_s1 + $0x28] sm:$0xff] }
   0x2   :  { %v296_v1 = vld [vmem:[%s392_s1 + $0x78] sm:$0xff]  ;;  %166 = vmatpush.bf16.msra.mxu0 %v288_v0  ;;  %v295_v3 = vld [vmem:[%s392_s1 + $0x70] sm:$0xff]  ;;  %v294_v6 = vld [vmem:[%s392_s1 + $0x68] sm:$0xff] }
   0x3   :  { %180 = vmatpush.bf16.msra.mxu1 %v296_v1  ;;  %v48_v7 = vld [vmem:[%s393_s2] sm:$0xff]  ;;  %v49_v10 = vld [vmem:[%s393_s2 + $0x8] sm:$0xff]  ;;  %v284_v11 = vld [vmem:[%s392_s1 + $0x18] sm:$0xff] }
   0x4   :  { %52 = vperm.xlu0 %298, %v48_v7   ;;  %v285_v8 = vld [vmem:[%s392_s1 + $0x20] sm:$0xff]  ;;  %v292_v12 = vld [vmem:[%s392_s1 + $0x58] sm:$0xff]  ;;  %v283_v13 = vld [vmem:[%s392_s1 + $0x10] sm:$0xff] }
   0x5   :  { %v293_v9 = vld [vmem:[%s392_s1 + $0x60] sm:$0xff]  ;;  %v291_v14 = vld [vmem:[%s392_s1 + $0x50] sm:$0xff]  ;;  %v282_v15 = vld [vmem:[%s392_s1 + $0x8] sm:$0xff] }
   0x6   :  { %167 = vmatpush.bf16.msra.mxu0 %v287_v2  ;;  %v290_v16 = vld [vmem:[%s392_s1 + $0x48] sm:$0xff]  ;;  %v281_v17 = vld [vmem:[%s392_s1] sm:$0xff] }
   0x7   :  { %181 = vmatpush.bf16.msra.mxu1 %v295_v3  ;;  %v289_v18 = vld [vmem:[%s392_s1 + $0x40] sm:$0xff]  ;;  %v280_v20 = vld [vmem:[%s394_s0 + $0x4] sm:$0xf0]  ;;  %v211_v22 = vld [vmem:[%s394_s0 + $0x8] sm:$0xf0] }
   0x8   :  { %v209_v19 = vld [vmem:[%s394_s0] sm:$0xf]  ;;  %v279_v21 = vld [vmem:[%s394_s0 + $0x4] sm:$0xf] }
   0x9   :  { %v210_v23 = vor.u32 %v280_v20, %v209_v19  ;;  %v214_v24 = vor.u32 %v279_v21, %v211_v22 }
   0xa   :  { %168 = vmatpush.bf16.msra.mxu0 %v286_v5 }
   0xb   :  { %182 = vmatpush.bf16.msra.mxu1 %v294_v6 }
   0xc   :  { %57 = vperm.xlu0 %298, %v49_v10  }
   0xe   :  { %169 = vmatpush.bf16.msra.mxu0 %v285_v8 }
   0xf   :  { %183 = vmatpush.bf16.msra.mxu1 %v293_v9 }
  0x12   :  { %170 = vmatpush.bf16.msra.mxu0 %v284_v11 }
  0x13   :  { %184 = vmatpush.bf16.msra.mxu1 %v292_v12 }
  0x16   :  { %171 = vmatpush.bf16.msra.mxu0 %v283_v13 }
  0x17   :  { %185 = vmatpush.bf16.msra.mxu1 %v291_v14 }
  0x1a   :  { %172 = vmatpush.bf16.msra.mxu0 %v282_v15 }
  0x1b   :  { %186 = vmatpush.bf16.msra.mxu1 %v290_v16 }
  0x1e   :  { %173 = vmatpush.bf16.msra.mxu0 %v281_v17 }
  0x1f   :  { %187 = vmatpush.bf16.msra.mxu1 %v289_v18 }
  0x21   :  { %174 = vmatmul.bf16.vlgmr.msra.gmra.mxu0 %v210_v23 }
  0x22   :  { %188 = vmatmul.bf16.vlgmr.msra.gmra.mxu1 %v214_v24 }
  0x76   :  { %v53_v25 = vpop.permute.xlu0 %52 }
  0x7e   :  { %v58_v32 = vpop.permute.xlu0 %57 }
  0x9e   :  { %v175_v26 = vpop.f32.mrf.mxu0 }
  0x9f   :  { %v189_v27 = vpop.f32.mrf.mxu1  ;;  %v176_v28 = vadd.f32 %v175_v26, %v53_v25 }
  0xa1   :  { %v190_v29 = vadd.f32 %v189_v27, %v176_v28 }
  0xa3   :  { %vm194_vm0 = vcmp.ge.f32.partialorder %v190_v29, 0.0  ;;  %v196_v30 = vmul.f32 0.2, %v190_v29 }
  0xa5   :  { %v198_v31 = vsel %vm194_vm0, %v190_v29, %v196_v30 }
  0xa6   :  { %201 = vst.msk [vmem:[%s395_s3] sm:$0xff] %vm200_vm1, %v198_v31  ;;  %v177_v33 = vpop.f32.mrf.mxu0 }
  0xa7   :  { %v178_v34 = vadd.f32 %v177_v33, %v58_v32  ;;  %v191_v35 = vpop.f32.mrf.mxu1 }
  0xa9   :  { %v192_v36 = vadd.f32 %v191_v35, %v178_v34 }
  0xab   :  { %vm195_vm2 = vcmp.ge.f32.partialorder %v192_v36, 0.0  ;;  %v197_v37 = vmul.f32 0.2, %v192_v36 }
  0xad   :  { %v199_v38 = vsel %vm195_vm2, %v192_v36, %v197_v37 }
  0xae   :  { %202 = vst.msk [vmem:[%s395_s3 + $0x8] sm:$0xff] %vm200_vm1, %v199_v38 }

// kernel: _lambda_.17
= control target key start
LH: loop header
LB: loop body
LE: loop exit
PB: predicated region body
PF: predicated region fallthrough
CT: control target
= control target key end

     0   :  { %vm462_vm0 = vcmask 261120   ;;  %s1567_s1 = inlined_call_operand.vmem [shape: bf16[288,512], index: 1, kind: input, shape index: {}]   ;;  %s1568_s0 = inlined_call_operand.vmem [shape: bf16[8,288], index: 0, kind: input, shape index: {}]   ;;  %s1569_s2 = inlined_call_operand.vmem [shape: f32[8,1], index: 2, kind: input, shape index: {}]   ;;  %s1570_s3 = inlined_call_operand.vmem [shape: f32[8,1], index: 3, kind: input, shape index: {}]   ;;  %s1571_s4 = inlined_call_operand.vmem [shape: f32[8,512], index: 4, kind: output, shape index: {}]  }
   0x1   :  { %v808_v0 = vld [vmem:[%s1567_s1 + $0xe0] sm:$0xf]  ;;  %v1016_v1 = vld [vmem:[%s1567_s1 + $0xec] sm:$0xf0]  ;;  %v1046_v9 = vld [vmem:[%s1567_s1 + $0x1e4] sm:$0xf] }
   0x2   :  { %v936_v2 = vld [vmem:[%s1567_s1 + $0x1e0] sm:$0xf]  ;;  %v809_v3 = vor.u32 %v1016_v1, %v808_v0  ;;  %v1048_v4 = vld [vmem:[%s1567_s1 + $0x1ec] sm:$0xf0]  ;;  %v938_v10 = vld [vmem:[%s1567_s1 + $0x1f0] sm:$0xf0] }
   0x3   :  { %v968_v5 = vld [vmem:[%s1567_s1 + $0x220] sm:$0xf]  ;;  %v1056_v6 = vld [vmem:[%s1567_s1 + $0x22c] sm:$0xf0]  ;;  %v937_v7 = vor.u32 %v1048_v4, %v936_v2  ;;  %v941_v12 = vor.u32 %v1046_v9, %v938_v10  ;;  %v1042_v20 = vld [vmem:[%s1567_s1 + $0x1c4] sm:$0xf] }
   0x4   :  { %v969_v8 = vor.u32 %v1056_v6, %v968_v5  ;;  %v792_v11 = vld [vmem:[%s1567_s1 + $0xc0] sm:$0xf]  ;;  %466 = vmatpush.bf16.msra.mxu0 %v809_v3  ;;  %v1012_v13 = vld [vmem:[%s1567_s1 + $0xcc] sm:$0xf0]  ;;  %v922_v22 = vld [vmem:[%s1567_s1 + $0x1d0] sm:$0xf0] }
   0x5   :  { %v920_v14 = vld [vmem:[%s1567_s1 + $0x1c0] sm:$0xf]  ;;  %v1044_v15 = vld [vmem:[%s1567_s1 + $0x1cc] sm:$0xf0]  ;;  %479 = vmatpush.bf16.msra.mxu1 %v937_v7  ;;  %v793_v16 = vor.u32 %v1012_v13, %v792_v11  ;;  %518 = vmatpush.bf16.msra.mxu2 %v941_v12  ;;  %v1014_v23 = vld [vmem:[%s1567_s1 + $0xe4] sm:$0xf]  ;;  %v925_v25 = vor.u32 %v1042_v20, %v922_v22 }
   0x6   :  { %498 = vmatpush.bf16.msra.mxu3 %v969_v8  ;;  %v921_v17 = vor.u32 %v1044_v15, %v920_v14  ;;  %v952_v18 = vld [vmem:[%s1567_s1 + $0x200] sm:$0xf]  ;;  %v1052_v19 = vld [vmem:[%s1567_s1 + $0x20c] sm:$0xf0]  ;;  %v810_v24 = vld [vmem:[%s1567_s1 + $0xf0] sm:$0xf0] }
   0x7   :  { %v953_v21 = vor.u32 %v1052_v19, %v952_v18  ;;  %v813_v26 = vor.u32 %v1014_v23, %v810_v24  ;;  %v776_v27 = vld [vmem:[%s1567_s1 + $0xa0] sm:$0xf]  ;;  %v1008_v28 = vld [vmem:[%s1567_s1 + $0xac] sm:$0xf0]  ;;  %v1038_v32 = vld [vmem:[%s1567_s1 + $0x1a4] sm:$0xf] }
   0x8   :  { %v904_v29 = vld [vmem:[%s1567_s1 + $0x1a0] sm:$0xf]  ;;  %467 = vmatpush.bf16.msra.mxu0 %v793_v16  ;;  %v777_v30 = vor.u32 %v1008_v28, %v776_v27  ;;  %v1040_v31 = vld [vmem:[%s1567_s1 + $0x1ac] sm:$0xf0]  ;;  %v906_v33 = vld [vmem:[%s1567_s1 + $0x1b0] sm:$0xf0] }
   0x9   :  { %480 = vmatpush.bf16.msra.mxu1 %v921_v17  ;;  %v905_v34 = vor.u32 %v1040_v31, %v904_v29  ;;  %v1010_v35 = vld [vmem:[%s1567_s1 + $0xc4] sm:$0xf]  ;;  %v794_v36 = vld [vmem:[%s1567_s1 + $0xd0] sm:$0xf0]  ;;  %v760_v37 = vld [vmem:[%s1567_s1 + $0x80] sm:$0xf]  ;;  %519 = vmatpush.bf16.msra.mxu2 %v925_v25  ;;  %v909_v38 = vor.u32 %v1038_v32, %v906_v33 }
   0xa   :  { %499 = vmatpush.bf16.msra.mxu3 %v953_v21  ;;  %v797_v39 = vor.u32 %v1010_v35, %v794_v36  ;;  %v1004_v40 = vld [vmem:[%s1567_s1 + $0x8c] sm:$0xf0]  ;;  %v888_v41 = vld [vmem:[%s1567_s1 + $0x180] sm:$0xf]  ;;  %v1034_v43 = vld [vmem:[%s1567_s1 + $0x184] sm:$0xf] }
   0xb   :  { %v1036_v42 = vld [vmem:[%s1567_s1 + $0x18c] sm:$0xf0]  ;;  %v890_v44 = vld [vmem:[%s1567_s1 + $0x190] sm:$0xf0]  ;;  %v1006_v45 = vld [vmem:[%s1567_s1 + $0xa4] sm:$0xf]  ;;  %v761_v46 = vor.u32 %v1004_v40, %v760_v37 }
   0xc   :  { %468 = vmatpush.bf16.msra.mxu0 %v777_v30  ;;  %v778_v47 = vld [vmem:[%s1567_s1 + $0xb0] sm:$0xf0]  ;;  %v889_v48 = vor.u32 %v1036_v42, %v888_v41  ;;  %v744_v49 = vld [vmem:[%s1567_s1 + $0x60] sm:$0xf]  ;;  %v1000_v50 = vld [vmem:[%s1567_s1 + $0x6c] sm:$0xf0]  ;;  %v893_v51 = vor.u32 %v1034_v43, %v890_v44 }
   0xd   :  { %481 = vmatpush.bf16.msra.mxu1 %v905_v34  ;;  %520 = vmatpush.bf16.msra.mxu2 %v909_v38  ;;  %v781_v52 = vor.u32 %v1006_v45, %v778_v47  ;;  %v872_v53 = vld [vmem:[%s1567_s1 + $0x160] sm:$0xf]  ;;  %v1032_v54 = vld [vmem:[%s1567_s1 + $0x16c] sm:$0xf0]  ;;  %v1030_v55 = vld [vmem:[%s1567_s1 + $0x164] sm:$0xf]  ;;  %v745_v59 = vor.u32 %v1000_v50, %v744_v49 }
   0xe   :  { %505 = vmatpush.bf16.msrb.mxu3 %v813_v26  ;;  %v874_v56 = vld [vmem:[%s1567_s1 + $0x170] sm:$0xf0]  ;;  %v1002_v57 = vld [vmem:[%s1567_s1 + $0x84] sm:$0xf]  ;;  %v19_v60 = vld [vmem:[%s1568_s0 + $0x8] sm:$0xf]  ;;  %v873_v61 = vor.u32 %v1032_v54, %v872_v53 }
   0xf   :  { %v762_v58 = vld [vmem:[%s1567_s1 + $0x90] sm:$0xf0]  ;;  %v728_v62 = vld [vmem:[%s1567_s1 + $0x40] sm:$0xf]  ;;  %v996_v63 = vld [vmem:[%s1567_s1 + $0x4c] sm:$0xf0]  ;;  %v96_v0 = vunpack.c.l.b16 %v19_v60  ;;  %v877_v1 = vor.u32 %v1030_v55, %v874_v56 }
  0x10   :  { %469 = vmatpush.bf16.msra.mxu0 %v761_v46  ;;  %v765_v2 = vor.u32 %v1002_v57, %v762_v58  ;;  %v856_v3 = vld [vmem:[%s1567_s1 + $0x140] sm:$0xf]  ;;  %v1028_v4 = vld [vmem:[%s1567_s1 + $0x14c] sm:$0xf0]  ;;  %v1026_v5 = vld [vmem:[%s1567_s1 + $0x144] sm:$0xf]  ;;  %v729_v10 = vor.u32 %v996_v63, %v728_v62 }
  0x11   :  { %482 = vmatpush.bf16.msra.mxu1 %v889_v48  ;;  %521 = vmatpush.bf16.msra.mxu2 %v893_v51  ;;  %v1233_v6 = vpack.c.b16 %v96_v0, %v96_v0  ;;  %v858_v7 = vld [vmem:[%s1567_s1 + $0x150] sm:$0xf0]  ;;  %v998_v8 = vld [vmem:[%s1567_s1 + $0x64] sm:$0xf]  ;;  %v857_v11 = vor.u32 %v1028_v4, %v856_v3  ;;  %v712_v12 = vld [vmem:[%s1567_s1 + $0x20] sm:$0xf] }
  0x12   :  { %506 = vmatpush.bf16.msrb.mxu3 %v797_v39  ;;  %v746_v9 = vld [vmem:[%s1567_s1 + $0x70] sm:$0xf0]  ;;  %v992_v13 = vld [vmem:[%s1567_s1 + $0x2c] sm:$0xf0]  ;;  %v861_v14 = vor.u32 %v1026_v5, %v858_v7  ;;  %v840_v16 = vld [vmem:[%s1567_s1 + $0x120] sm:$0xf] }
  0x13   :  { %982 = vmatmul.msk.bf16.vlgmr.msra.gmra.mxu3 %vm462_vm0, %v1233_v6  ;;  %v749_v15 = vor.u32 %v998_v8, %v746_v9  ;;  %v1024_v17 = vld [vmem:[%s1567_s1 + $0x12c] sm:$0xf0]  ;;  %v1022_v18 = vld [vmem:[%s1567_s1 + $0x124] sm:$0xf]  ;;  %v842_v19 = vld [vmem:[%s1567_s1 + $0x130] sm:$0xf0]  ;;  %v713_v22 = vor.u32 %v992_v13, %v712_v12 }
  0x14   :  { %470 = vmatpush.bf16.msra.mxu0 %v745_v59  ;;  %v994_v20 = vld [vmem:[%s1567_s1 + $0x44] sm:$0xf]  ;;  %v730_v21 = vld [vmem:[%s1567_s1 + $0x50] sm:$0xf0]  ;;  %v696_v23 = vld [vmem:[%s1567_s1] sm:$0xf]  ;;  %v841_v26 = vor.u32 %v1024_v17, %v840_v16  ;;  %v845_v30 = vor.u32 %v1022_v18, %v842_v19 }
  0x15   :  { %483 = vmatpush.bf16.msra.mxu1 %v873_v61  ;;  %522 = vmatpush.bf16.msra.mxu2 %v877_v1  ;;  %v988_v24 = vld [vmem:[%s1567_s1 + $0xc] sm:$0xf0]  ;;  %v824_v25 = vld [vmem:[%s1567_s1 + $0x100] sm:$0xf]  ;;  %v1018_v28 = vld [vmem:[%s1567_s1 + $0x104] sm:$0xf]  ;;  %v733_v31 = vor.u32 %v994_v20, %v730_v21 }
  0x16   :  { %507 = vmatpush.bf16.msrb.mxu3 %v781_v52  ;;  %v1020_v27 = vld [vmem:[%s1567_s1 + $0x10c] sm:$0xf0]  ;;  %v18_v29 = vld [vmem:[%s1568_s0] sm:$0xff]  ;;  %v826_v32 = vld [vmem:[%s1567_s1 + $0x110] sm:$0xf0]  ;;  %v697_v38 = vor.u32 %v988_v24, %v696_v23 }
  0x17   :  { %v1054_v33 = vld [vmem:[%s1567_s1 + $0x224] sm:$0xf]  ;;  %v970_v34 = vld [vmem:[%s1567_s1 + $0x230] sm:$0xf0]  ;;  %v816_v37 = vld [vmem:[%s1567_s1 + $0xe8] sm:$0xf]  ;;  %v94_v42 = vunpack.c.l.b16 %v18_v29  ;;  %v825_v43 = vor.u32 %v1020_v27, %v824_v25  ;;  %v95_v45 = vunpack.c.h.b16 %v18_v29  ;;  %v829_v48 = vor.u32 %v1018_v28, %v826_v32 }
  0x18   :  { %471 = vmatpush.bf16.msra.mxu0 %v729_v10  ;;  %v990_v35 = vld [vmem:[%s1567_s1 + $0x24] sm:$0xf]  ;;  %v714_v36 = vld [vmem:[%s1567_s1 + $0x30] sm:$0xf0]  ;;  %v1017_v39 = vld [vmem:[%s1567_s1 + $0xf4] sm:$0xf0]  ;;  %v973_v44 = vor.u32 %v1054_v33, %v970_v34 }
  0x19   :  { %484 = vmatpush.bf16.msra.mxu1 %v857_v11  ;;  %523 = vmatpush.bf16.msra.mxu2 %v861_v14  ;;  %v976_v40 = vld [vmem:[%s1567_s1 + $0x228] sm:$0xf]  ;;  %v1057_v41 = vld [vmem:[%s1567_s1 + $0x234] sm:$0xf0]  ;;  %v986_v46 = vld [vmem:[%s1567_s1 + $0x4] sm:$0xf]  ;;  %v717_v49 = vor.u32 %v990_v35, %v714_v36  ;;  %v817_v53 = vor.u32 %v1017_v39, %v816_v37  ;;  %v1339_v58 = vpack.c.b16 %v94_v42, %v94_v42 }
  0x1a   :  { %508 = vmatpush.bf16.msrb.mxu3 %v765_v2  ;;  %v698_v47 = vld [vmem:[%s1567_s1 + $0x10] sm:$0xf0]  ;;  %v800_v50 = vld [vmem:[%s1567_s1 + $0xc8] sm:$0xf]  ;;  %v1050_v51 = vld [vmem:[%s1567_s1 + $0x204] sm:$0xf]  ;;  %v977_v54 = vor.u32 %v1057_v41, %v976_v40  ;;  %v1350_v62 = vpack.c.b16 %v95_v45, %v95_v45 }
  0x1b   :  { %v954_v52 = vld [vmem:[%s1567_s1 + $0x210] sm:$0xf0]  ;;  %v1013_v55 = vld [vmem:[%s1567_s1 + $0xd4] sm:$0xf0]  ;;  %v1015_v56 = vld [vmem:[%s1567_s1 + $0xec] sm:$0xf]  ;;  %v701_v3 = vor.u32 %v986_v46, %v698_v47 }
  0x1c   :  { %472 = vmatpush.bf16.msra.mxu0 %v713_v22  ;;  %v818_v57 = vld [vmem:[%s1567_s1 + $0xf8] sm:$0xf0]  ;;  %v960_v59 = vld [vmem:[%s1567_s1 + $0x208] sm:$0xf]  ;;  %v1053_v60 = vld [vmem:[%s1567_s1 + $0x214] sm:$0xf0]  ;;  %v957_v63 = vor.u32 %v1050_v51, %v954_v52  ;;  %v801_v5 = vor.u32 %v1013_v55, %v800_v50 }
  0x1d   :  { %485 = vmatpush.bf16.msra.mxu1 %v841_v26  ;;  %524 = vmatpush.bf16.msra.mxu2 %v845_v30  ;;  %v944_v61 = vld [vmem:[%s1567_s1 + $0x1e8] sm:$0xf]  ;;  %v1049_v0 = vld [vmem:[%s1567_s1 + $0x1f4] sm:$0xf0]  ;;  %v1047_v1 = vld [vmem:[%s1567_s1 + $0x1ec] sm:$0xf]  ;;  %v821_v4 = vor.u32 %v1015_v56, %v818_v57  ;;  %v961_v7 = vor.u32 %v1053_v60, %v960_v59 }
  0x1e   :  { %509 = vmatpush.bf16.msrb.mxu3 %v749_v15  ;;  %v946_v2 = vld [vmem:[%s1567_s1 + $0x1f8] sm:$0xf0]  ;;  %v1011_v8 = vld [vmem:[%s1567_s1 + $0xcc] sm:$0xf]  ;;  %v945_v10 = vor.u32 %v1049_v0, %v944_v61  ;;  %v784_v12 = vld [vmem:[%s1567_s1 + $0xa8] sm:$0xf] }
  0x1f   :  { %v802_v9 = vld [vmem:[%s1567_s1 + $0xd8] sm:$0xf0]  ;;  %v949_v11 = vor.u32 %v1047_v1, %v946_v2  ;;  %v1009_v13 = vld [vmem:[%s1567_s1 + $0xb4] sm:$0xf0]  ;;  %v928_v14 = vld [vmem:[%s1567_s1 + $0x1c8] sm:$0xf] }
  0x20   :  { %473 = vmatpush.bf16.msra.mxu0 %v697_v38  ;;  %v1045_v15 = vld [vmem:[%s1567_s1 + $0x1d4] sm:$0xf0]  ;;  %v1043_v16 = vld [vmem:[%s1567_s1 + $0x1cc] sm:$0xf]  ;;  %v930_v17 = vld [vmem:[%s1567_s1 + $0x1d8] sm:$0xf0]  ;;  %v805_v18 = vor.u32 %v1011_v8, %v802_v9  ;;  %v785_v19 = vor.u32 %v1009_v13, %v784_v12 }
  0x21   :  { %486 = vmatpush.bf16.msra.mxu1 %v825_v43  ;;  %525 = vmatpush.bf16.msra.mxu2 %v829_v48  ;;  %v1007_v20 = vld [vmem:[%s1567_s1 + $0xac] sm:$0xf]  ;;  %v786_v21 = vld [vmem:[%s1567_s1 + $0xb8] sm:$0xf0]  ;;  %v929_v22 = vor.u32 %v1045_v15, %v928_v14  ;;  %v933_v23 = vor.u32 %v1043_v16, %v930_v17  ;;  %v768_v24 = vld [vmem:[%s1567_s1 + $0x88] sm:$0xf] }
  0x22   :  { %510 = vmatpush.bf16.msrb.mxu3 %v733_v31  ;;  %v1005_v25 = vld [vmem:[%s1567_s1 + $0x94] sm:$0xf0]  ;;  %v912_v26 = vld [vmem:[%s1567_s1 + $0x1a8] sm:$0xf]  ;;  %v1039_v28 = vld [vmem:[%s1567_s1 + $0x1ac] sm:$0xf]  ;;  %v789_v30 = vor.u32 %v1007_v20, %v786_v21 }
  0x23   :  { %474 = vmatmul.bf16.vlgmr.msra.gmra.mxu0 %v1339_v58  ;;  %v1041_v27 = vld [vmem:[%s1567_s1 + $0x1b4] sm:$0xf0]  ;;  %v914_v29 = vld [vmem:[%s1567_s1 + $0x1b8] sm:$0xf0]  ;;  %v769_v31 = vor.u32 %v1005_v25, %v768_v24  ;;  %v1003_v32 = vld [vmem:[%s1567_s1 + $0x8c] sm:$0xf] }
  0x24   :  { %537 = vmatpush.bf16.msrb.mxu0 %v973_v44  ;;  %487 = vmatmul.bf16.vlgmr.msra.gmra.mxu1 %v1350_v62  ;;  %v770_v33 = vld [vmem:[%s1567_s1 + $0x98] sm:$0xf0]  ;;  %v913_v34 = vor.u32 %v1041_v27, %v912_v26  ;;  %v917_v35 = vor.u32 %v1039_v28, %v914_v29  ;;  %v752_v36 = vld [vmem:[%s1567_s1 + $0x68] sm:$0xf]  ;;  %v1001_v37 = vld [vmem:[%s1567_s1 + $0x74] sm:$0xf0] }
  0x25   :  { %544 = vmatpush.bf16.msrb.mxu1 %v817_v53  ;;  %576 = vmatpush.bf16.msrb.mxu2 %v977_v54  ;;  %v896_v38 = vld [vmem:[%s1567_s1 + $0x188] sm:$0xf]  ;;  %v1037_v39 = vld [vmem:[%s1567_s1 + $0x194] sm:$0xf0]  ;;  %v1035_v40 = vld [vmem:[%s1567_s1 + $0x18c] sm:$0xf]  ;;  %v773_v42 = vor.u32 %v1003_v32, %v770_v33  ;;  %v753_v43 = vor.u32 %v1001_v37, %v752_v36 }
  0x26   :  { %511 = vmatpush.bf16.msrb.mxu3 %v717_v49  ;;  %526 = vmatmul.bf16.vlgmr.msra.gmra.mxu2 %v1350_v62  ;;  %v898_v41 = vld [vmem:[%s1567_s1 + $0x198] sm:$0xf0]  ;;  %v999_v44 = vld [vmem:[%s1567_s1 + $0x6c] sm:$0xf]  ;;  %v897_v46 = vor.u32 %v1037_v39, %v896_v38  ;;  %v736_v48 = vld [vmem:[%s1567_s1 + $0x48] sm:$0xf] }
  0x27   :  { %v754_v45 = vld [vmem:[%s1567_s1 + $0x78] sm:$0xf0]  ;;  %v901_v47 = vor.u32 %v1035_v40, %v898_v41  ;;  %v997_v49 = vld [vmem:[%s1567_s1 + $0x54] sm:$0xf0]  ;;  %v880_v50 = vld [vmem:[%s1567_s1 + $0x168] sm:$0xf] }
  0x28   :  { %538 = vmatpush.bf16.msrb.mxu0 %v957_v63  ;;  %v1033_v51 = vld [vmem:[%s1567_s1 + $0x174] sm:$0xf0]  ;;  %v1031_v52 = vld [vmem:[%s1567_s1 + $0x16c] sm:$0xf]  ;;  %v882_v53 = vld [vmem:[%s1567_s1 + $0x178] sm:$0xf0]  ;;  %v757_v54 = vor.u32 %v999_v44, %v754_v45  ;;  %v737_v55 = vor.u32 %v997_v49, %v736_v48 }
  0x29   :  { %545 = vmatpush.bf16.msrb.mxu1 %v801_v5  ;;  %577 = vmatpush.bf16.msrb.mxu2 %v961_v7  ;;  %v995_v56 = vld [vmem:[%s1567_s1 + $0x4c] sm:$0xf]  ;;  %v738_v57 = vld [vmem:[%s1567_s1 + $0x58] sm:$0xf0]  ;;  %v881_v59 = vor.u32 %v1033_v51, %v880_v50  ;;  %v885_v60 = vor.u32 %v1031_v52, %v882_v53  ;;  %v720_v61 = vld [vmem:[%s1567_s1 + $0x28] sm:$0xf] }
  0x2a   :  { %512 = vmatpush.bf16.msrb.mxu3 %v701_v3  ;;  %v993_v63 = vld [vmem:[%s1567_s1 + $0x34] sm:$0xf0]  ;;  %v864_v0 = vld [vmem:[%s1567_s1 + $0x148] sm:$0xf]  ;;  %v1027_v2 = vld [vmem:[%s1567_s1 + $0x14c] sm:$0xf] }
  0x2b   :  { %v1029_v1 = vld [vmem:[%s1567_s1 + $0x154] sm:$0xf0]  ;;  %v866_v3 = vld [vmem:[%s1567_s1 + $0x158] sm:$0xf0]  ;;  %v721_v5 = vor.u32 %v993_v63, %v720_v61  ;;  %v991_v7 = vld [vmem:[%s1567_s1 + $0x2c] sm:$0xf] }
  0x2c   :  { %583 = vmatpush.bf16.msra.mxu0 %v821_v4  ;;  %v741_v4 = vor.u32 %v995_v56, %v738_v57  ;;  %v722_v8 = vld [vmem:[%s1567_s1 + $0x38] sm:$0xf0]  ;;  %v865_v9 = vor.u32 %v1029_v1, %v864_v0  ;;  %v989_v12 = vld [vmem:[%s1567_s1 + $0x14] sm:$0xf0]  ;;  %v848_v13 = vld [vmem:[%s1567_s1 + $0x128] sm:$0xf] }
  0x2d   :  { %596 = vmatpush.bf16.msra.mxu2 %v949_v11  ;;  %513 = vmatmul.bf16.vlgmr.msrb.gmra.mxu3 %v1339_v58  ;;  %v704_v11 = vld [vmem:[%s1567_s1 + $0x8] sm:$0xf]  ;;  %v1025_v14 = vld [vmem:[%s1567_s1 + $0x134] sm:$0xf0]  ;;  %v1023_v15 = vld [vmem:[%s1567_s1 + $0x12c] sm:$0xf]  ;;  %v725_v17 = vor.u32 %v991_v7, %v722_v8 }
  0x2e   :  { %557 = vmatpush.bf16.msra.mxu3 %v945_v10  ;;  %546 = vmatpush.bf16.msrb.mxu1 %v785_v19  ;;  %v869_v10 = vor.u32 %v1027_v2, %v866_v3  ;;  %v850_v16 = vld [vmem:[%s1567_s1 + $0x138] sm:$0xf0]  ;;  %v705_v20 = vor.u32 %v989_v12, %v704_v11  ;;  %v987_v21 = vld [vmem:[%s1567_s1 + $0xc] sm:$0xf]  ;;  %v832_v25 = vld [vmem:[%s1567_s1 + $0x108] sm:$0xf] }
  0x2f   :  { %v978_v19 = vld [vmem:[%s1567_s1 + $0x238] sm:$0xf0]  ;;  %v853_v24 = vor.u32 %v1023_v15, %v850_v16  ;;  %v1021_v27 = vld [vmem:[%s1567_s1 + $0x114] sm:$0xf0]  ;;  %v1019_v28 = vld [vmem:[%s1567_s1 + $0x10c] sm:$0xf] }
  0x30   :  { %584 = vmatpush.bf16.msra.mxu0 %v805_v18  ;;  %v1055_v18 = vld [vmem:[%s1567_s1 + $0x22c] sm:$0xf]  ;;  %v834_v29 = vld [vmem:[%s1567_s1 + $0x118] sm:$0xf0]  ;;  %v833_v33 = vor.u32 %v1021_v27, %v832_v25 }
  0x31   :  { %597 = vmatpush.bf16.msra.mxu2 %v933_v23  ;;  %v849_v23 = vor.u32 %v1025_v14, %v848_v13  ;;  %v981_v26 = vor.u32 %v1055_v18, %v978_v19  ;;  %v962_v32 = vld [vmem:[%s1567_s1 + $0x218] sm:$0xf0] }
  0x32   :  { %558 = vmatpush.bf16.msra.mxu3 %v929_v22  ;;  %547 = vmatpush.bf16.msrb.mxu1 %v769_v31  ;;  %v706_v22 = vld [vmem:[%s1567_s1 + $0x18] sm:$0xf0]  ;;  %v1051_v31 = vld [vmem:[%s1567_s1 + $0x20c] sm:$0xf] }
  0x33   :  { %983 = vmatmul.msk.bf16.vlgmr.msrb.gmra.mxu0 %vm462_vm0, %v1233_v6 }
  0x34   :  { %585 = vmatpush.bf16.msra.mxu0 %v789_v30  ;;  %v709_v30 = vor.u32 %v987_v21, %v706_v22 }
  0x35   :  { %598 = vmatpush.bf16.msra.mxu2 %v917_v35  ;;  %v965_v35 = vor.u32 %v1051_v31, %v962_v32 }
  0x36   :  { %559 = vmatpush.bf16.msra.mxu3 %v913_v34  ;;  %548 = vmatpush.bf16.msrb.mxu1 %v753_v43  ;;  %v837_v34 = vor.u32 %v1019_v28, %v834_v29  ;;  %v642_v29 = vld [vmem:[%s1569_s2] sm:$0xff] }
  0x37   :  { %984 = vmatmul.msk.bf16.vlgmr.msrb.gmra.mxu2 %vm462_vm0, %v1233_v6 }
  0x38   :  { %586 = vmatpush.bf16.msra.mxu0 %v773_v42 }
  0x39   :  { %599 = vmatpush.bf16.msra.mxu2 %v901_v47 }
  0x3a   :  { %560 = vmatpush.bf16.msra.mxu3 %v897_v46  ;;  %549 = vmatpush.bf16.msrb.mxu1 %v737_v55 }
  0x3c   :  { %587 = vmatpush.bf16.msra.mxu0 %v757_v54 }
  0x3d   :  { %600 = vmatpush.bf16.msra.mxu2 %v885_v60 }
  0x3e   :  { %561 = vmatpush.bf16.msra.mxu3 %v881_v59  ;;  %550 = vmatpush.bf16.msrb.mxu1 %v721_v5 }
  0x40   :  { %588 = vmatpush.bf16.msra.mxu0 %v741_v4 }
  0x41   :  { %601 = vmatpush.bf16.msra.mxu2 %v869_v10 }
  0x42   :  { %562 = vmatpush.bf16.msra.mxu3 %v865_v9  ;;  %551 = vmatpush.bf16.msrb.mxu1 %v705_v20  ;;  %v1063_v20 = vmov 0  }
  0x43   :  { %1059 = vset.pattern.permute.xlu1 %v1063_v20  ;;  %1060 = vset.pattern.permute.xlu0 %v1063_v20 }
  0x44   :  { %589 = vmatpush.bf16.msra.mxu0 %v725_v17 }
  0x45   :  { %602 = vmatpush.bf16.msra.mxu2 %v853_v24  ;;  %552 = vmatmul.bf16.vlgmr.msrb.gmra.mxu1 %v1339_v58 }
  0x46   :  { %563 = vmatpush.bf16.msra.mxu3 %v849_v23  ;;  %615 = vmatpush.bf16.msra.mxu1 %v981_v26 }
  0x48   :  { %590 = vmatpush.bf16.msra.mxu0 %v709_v30 }
  0x49   :  { %603 = vmatpush.bf16.msra.mxu2 %v837_v34 }
  0x4a   :  { %564 = vmatpush.bf16.msra.mxu3 %v833_v33  ;;  %616 = vmatpush.bf16.msra.mxu1 %v965_v35  ;;  %v664_v33 = vld [vmem:[%s1570_s3] sm:$0xff] }
  0x4b   :  { %591 = vmatmul.bf16.vlgmr.msra.gmra.mxu0 %v1339_v58 }
  0x4c   :  { %604 = vmatmul.bf16.vlgmr.msra.gmra.mxu2 %v1350_v62 }
  0x4d   :  { %565 = vmatmul.bf16.vlgmr.msra.gmra.mxu3 %v1350_v62 }
  0x55   :  { %985 = vmatmul.msk.bf16.vlgmr.msra.gmra.mxu1 %vm462_vm0, %v1233_v6 }
  0x96   :  { %v501_v36 = vpop.f32.mrf.mxu3 }
  0x9e   :  { %v503_v37 = vpop.f32.mrf.mxu3 }
  0xa0   :  { %v475_v38 = vpop.f32.mrf.mxu0 }
  0xa1   :  { %v488_v39 = vpop.f32.mrf.mxu1 }
  0xa2   :  { %v489_v62 = vadd.f32 %v488_v39, %v475_v38 }
  0xa4   :  { %v502_v55 = vadd.f32 %v501_v36, %v489_v62 }
  0xa8   :  { %v477_v41 = vpop.f32.mrf.mxu0 }
  0xa9   :  { %v527_v40 = vpop.f32.mrf.mxu2  ;;  %v490_v42 = vpop.f32.mrf.mxu1 }
  0xb0   :  { %v514_v43 = vpop.f32.mrf.mxu3  ;;  %v540_v45 = vpop.f32.mrf.mxu0 }
  0xb1   :  { %v529_v44 = vpop.f32.mrf.mxu2  ;;  %v528_v51 = vadd.f32 %v527_v40, %v514_v43 }
  0xb3   :  { %v541_v6 = vadd.f32 %v540_v45, %v528_v51 }
  0xb5   :  { %v622_v60 = vadd.f32 %v541_v6, %v502_v55 }
  0xb8   :  { %v516_v46 = vpop.f32.mrf.mxu3  ;;  %v542_v47 = vpop.f32.mrf.mxu0 }
  0xba   :  { %v579_v58 = vpop.f32.mrf.mxu2 }
  0xc2   :  { %v553_v48 = vpop.f32.mrf.mxu1  ;;  %v581_v49 = vpop.f32.mrf.mxu2 }
  0xc8   :  { %v592_v50 = vpop.f32.mrf.mxu0 }
  0xca   :  { %v555_v52 = vpop.f32.mrf.mxu1 }
  0xcf   :  { %v605_v54 = vpop.f32.mrf.mxu2 }
  0xd0   :  { %v566_v53 = vpop.f32.mrf.mxu3  ;;  %v594_v57 = vpop.f32.mrf.mxu0  ;;  %v606_v59 = vadd.f32 %v605_v54, %v592_v50 }
  0xd1   :  { %v567_v56 = vadd.f32 %v566_v53, %v553_v48 }
  0xd2   :  { %v618_v63 = vpop.f32.mrf.mxu1 }
  0xd3   :  { %v580_v61 = vadd.f32 %v579_v58, %v567_v56  ;;  %v619_v1 = vadd.f32 %v618_v63, %v606_v59 }
  0xd5   :  { %v623_v0 = vadd.f32 %v622_v60, %v580_v61 }
  0xd7   :  { %v607_v3 = vpop.f32.mrf.mxu2  ;;  %v624_v4 = vadd.f32 %v623_v0, %v619_v1 }
  0xd8   :  { %v568_v2 = vpop.f32.mrf.mxu3 }
  0xd9   :  { %625 = vadd.xlane.f32.xlu0 %v624_v4 }
  0xda   :  { %v620_v5 = vpop.f32.mrf.mxu1 }
 0x14c   :  { %v626_v7 = vpop.xlane.xlu0 %625 }
 0x14d   :  { %v627_v8 = vmul.f32 0.001953125, %v626_v7 }
 0x14f   :  { %v628_v9 = vsub.f32 %v502_v55, %v627_v8  ;;  %v629_v10 = vsub.f32 %v541_v6, %v627_v8  ;;  %v630_v11 = vsub.f32 %v580_v61, %v627_v8  ;;  %v631_v12 = vsub.f32 %v619_v1, %v627_v8 }
 0x151   :  { %v632_v13 = vmul.f32 %v628_v9, %v628_v9  ;;  %v633_v14 = vmul.f32 %v629_v10, %v629_v10  ;;  %v634_v15 = vmul.f32 %v630_v11, %v630_v11  ;;  %v635_v17 = vmul.f32 %v631_v12, %v631_v12 }
 0x153   :  { %v636_v16 = vadd.f32 %v633_v14, %v632_v13 }
 0x155   :  { %v637_v18 = vadd.f32 %v636_v16, %v634_v15 }
 0x157   :  { %v638_v19 = vadd.f32 %v637_v18, %v635_v17 }
 0x159   :  { %639 = vadd.xlane.f32.xlu0 %v638_v19 }
 0x1cc   :  { %v640_v21 = vpop.xlane.xlu0 %639 }
 0x1cd   :  { %v641_v22 = vmul.f32 0.001953125, %v640_v21 }
 0x1cf   :  { %v643_v23 = vadd.f32 1e-05, %v641_v22 }
 0x1d1   :  { %1061 = vrsqrt.f32 %v643_v23  ;;  %vm650_vm2 = vweird.f32 %v643_v23 }
 0x1d7   :  { %v1062_v24 = vpop.eup %1061 }
 0x1d8   :  { %v645_v25 = vmul.f32 %v1062_v24, %v643_v23  ;;  %vm651_vm1 = vweird.f32 %v1062_v24 }
 0x1d9   :  { %vm652_vm3 = vmor %vm650_vm2, %vm651_vm1 }
 0x1da   :  { %v646_v26 = vmul.f32 %v1062_v24, %v645_v25 }
 0x1dc   :  { %v647_v27 = vmul.f32 0.5, %v646_v26 }
 0x1de   :  { %v648_v28 = vsub.f32 1.5, %v647_v27 }
 0x1e0   :  { %v649_v30 = vmul.f32 %v1062_v24, %v648_v28 }
 0x1e2   :  { %v653_v31 = vsel %vm652_vm3, %v1062_v24, %v649_v30 }
 0x1e3   :  { %v654_v32 = vmul.f32 %v653_v31, %v642_v29 }
 0x1e5   :  { %657 = vperm.xlu1 %1059, %v654_v32  }
 0x1ed   :  { %667 = vperm.xlu1 %1059, %v664_v33  }
 0x257   :  { %v658_v34 = vpop.permute.xlu1 %657 }
 0x258   :  { %v660_v35 = vmul.f32 %v658_v34, %v628_v9  ;;  %v661_v36 = vmul.f32 %v658_v34, %v629_v10  ;;  %v662_v37 = vmul.f32 %v658_v34, %v630_v11  ;;  %v663_v38 = vmul.f32 %v658_v34, %v631_v12 }
 0x25f   :  { %v668_v39 = vpop.permute.xlu1 %667 }
 0x260   :  { %v670_v40 = vadd.f32 %v668_v39, %v660_v35  ;;  %v671_v41 = vadd.f32 %v668_v39, %v661_v36  ;;  %v672_v42 = vadd.f32 %v668_v39, %v662_v37  ;;  %v673_v43 = vadd.f32 %v668_v39, %v663_v38 }
 0x262   :  { %vm674_vm4 = vcmp.ge.f32.partialorder %v670_v40, 0.0  ;;  %vm675_vm5 = vcmp.ge.f32.partialorder %v671_v41, 0.0  ;;  %vm676_vm6 = vcmp.ge.f32.partialorder %v672_v42, 0.0  ;;  %vm677_vm7 = vcmp.ge.f32.partialorder %v673_v43, 0.0 }
 0x263   :  { %v678_v44 = vmul.f32 0.2, %v670_v40  ;;  %v679_v45 = vmul.f32 0.2, %v671_v41  ;;  %v680_v46 = vmul.f32 0.2, %v672_v42 }
 0x264   :  { %v681_v58 = vmul.f32 0.2, %v673_v43 }
 0x265   :  { %v682_v47 = vsel %vm674_vm4, %v670_v40, %v678_v44  ;;  %v683_v48 = vsel %vm675_vm5, %v671_v41, %v679_v45  ;;  %v684_v49 = vsel %vm676_vm6, %v672_v42, %v680_v46 }
 0x266   :  { %v685_v50 = vsel %vm677_vm7, %v673_v43, %v681_v58  ;;  %686 = vst [vmem:[%s1571_s4] sm:$0xff] %v682_v47 }
 0x267   :  { %687 = vst [vmem:[%s1571_s4 + $0x8] sm:$0xff] %v683_v48 }
 0x268   :  { %688 = vst [vmem:[%s1571_s4 + $0x10] sm:$0xff] %v684_v49 }
 0x269   :  { %689 = vst [vmem:[%s1571_s4 + $0x18] sm:$0xff] %v685_v50 }

// kernel: _lambda_.19
= control target key start
LH: loop header
LB: loop body
LE: loop exit
PB: predicated region body
PF: predicated region fallthrough
CT: control target
= control target key end

     0   :  { %vm243_vm0 = vcmask 130048   ;;  %vm356_vm1 = vcmask 1043456   ;;  %s812_s1 = inlined_call_operand.vmem [shape: bf16[144,512], index: 1, kind: input, shape index: {}]   ;;  %s813_s0 = inlined_call_operand.vmem [shape: bf16[3,144], index: 0, kind: input, shape index: {}]   ;;  %s814_s2 = inlined_call_operand.vmem [shape: f32[3,1], index: 2, kind: input, shape index: {}]   ;;  %s815_s3 = inlined_call_operand.vmem [shape: f32[3,512], index: 3, kind: output, shape index: {}]  }
   0x1   :  { %v481_v0 = vld [vmem:[%s812_s1 + $0xe0] sm:$0xf]  ;;  %v545_v1 = vld [vmem:[%s812_s1 + $0xec] sm:$0xf0]  ;;  %v543_v2 = vld [vmem:[%s812_s1 + $0xe4] sm:$0xf] }
   0x2   :  { %v482_v3 = vor.u32 %v545_v1, %v481_v0  ;;  %v483_v4 = vld [vmem:[%s812_s1 + $0xf0] sm:$0xf0]  ;;  %v497_v5 = vld [vmem:[%s812_s1 + $0x100] sm:$0xf]  ;;  %v549_v6 = vld [vmem:[%s812_s1 + $0x10c] sm:$0xf0] }
   0x3   :  { %v486_v7 = vor.u32 %v543_v2, %v483_v4  ;;  %v498_v8 = vor.u32 %v549_v6, %v497_v5  ;;  %v465_v9 = vld [vmem:[%s812_s1 + $0xc0] sm:$0xf]  ;;  %v541_v10 = vld [vmem:[%s812_s1 + $0xcc] sm:$0xf0]  ;;  %v539_v11 = vld [vmem:[%s812_s1 + $0xc4] sm:$0xf] }
   0x4   :  { %246 = vmatpush.bf16.msra.mxu0 %v482_v3  ;;  %v466_v12 = vor.u32 %v541_v10, %v465_v9  ;;  %v467_v13 = vld [vmem:[%s812_s1 + $0xd0] sm:$0xf0]  ;;  %v489_v14 = vld [vmem:[%s812_s1 + $0xe8] sm:$0xf]  ;;  %v546_v15 = vld [vmem:[%s812_s1 + $0xf4] sm:$0xf0] }
   0x5   :  { %272 = vmatpush.bf16.msra.mxu2 %v486_v7  ;;  %266 = vmatpush.bf16.msra.mxu1 %v498_v8  ;;  %v470_v16 = vor.u32 %v539_v11, %v467_v13  ;;  %v490_v17 = vor.u32 %v546_v15, %v489_v14  ;;  %v505_v18 = vld [vmem:[%s812_s1 + $0x108] sm:$0xf]  ;;  %v550_v19 = vld [vmem:[%s812_s1 + $0x114] sm:$0xf0]  ;;  %v449_v20 = vld [vmem:[%s812_s1 + $0xa0] sm:$0xf] }
   0x6   :  { %v506_v21 = vor.u32 %v550_v19, %v505_v18  ;;  %v537_v22 = vld [vmem:[%s812_s1 + $0xac] sm:$0xf0]  ;;  %v535_v23 = vld [vmem:[%s812_s1 + $0xa4] sm:$0xf]  ;;  %v451_v24 = vld [vmem:[%s812_s1 + $0xb0] sm:$0xf0] }
   0x7   :  { %v473_v25 = vld [vmem:[%s812_s1 + $0xc8] sm:$0xf]  ;;  %v542_v26 = vld [vmem:[%s812_s1 + $0xd4] sm:$0xf0]  ;;  %v544_v27 = vld [vmem:[%s812_s1 + $0xec] sm:$0xf]  ;;  %v450_v28 = vor.u32 %v537_v22, %v449_v20  ;;  %v454_v33 = vor.u32 %v535_v23, %v451_v24 }
   0x8   :  { %247 = vmatpush.bf16.msra.mxu0 %v466_v12  ;;  %318 = vmatpush.bf16.msra.mxu3 %v506_v21  ;;  %v474_v29 = vor.u32 %v542_v26, %v473_v25  ;;  %v491_v30 = vld [vmem:[%s812_s1 + $0xf8] sm:$0xf0]  ;;  %v433_v31 = vld [vmem:[%s812_s1 + $0x80] sm:$0xf]  ;;  %v533_v32 = vld [vmem:[%s812_s1 + $0x8c] sm:$0xf0] }
   0x9   :  { %298 = vmatpush.bf16.msrb.mxu1 %v490_v17  ;;  %273 = vmatpush.bf16.msra.mxu2 %v470_v16  ;;  %v494_v34 = vor.u32 %v544_v27, %v491_v30  ;;  %v531_v35 = vld [vmem:[%s812_s1 + $0x84] sm:$0xf]  ;;  %v435_v36 = vld [vmem:[%s812_s1 + $0x90] sm:$0xf0]  ;;  %v457_v37 = vld [vmem:[%s812_s1 + $0xa8] sm:$0xf]  ;;  %v434_v44 = vor.u32 %v533_v32, %v433_v31 }
   0xa   :  { %v538_v38 = vld [vmem:[%s812_s1 + $0xb4] sm:$0xf0]  ;;  %v540_v39 = vld [vmem:[%s812_s1 + $0xcc] sm:$0xf]  ;;  %v475_v40 = vld [vmem:[%s812_s1 + $0xd8] sm:$0xf0]  ;;  %v438_v48 = vor.u32 %v531_v35, %v435_v36 }
   0xb   :  { %v458_v41 = vor.u32 %v538_v38, %v457_v37  ;;  %v478_v42 = vor.u32 %v540_v39, %v475_v40  ;;  %v417_v43 = vld [vmem:[%s812_s1 + $0x60] sm:$0xf]  ;;  %v529_v45 = vld [vmem:[%s812_s1 + $0x6c] sm:$0xf0]  ;;  %v441_v46 = vld [vmem:[%s812_s1 + $0x88] sm:$0xf] }
   0xc   :  { %324 = vmatpush.bf16.msrb.mxu3 %v494_v34  ;;  %248 = vmatpush.bf16.msra.mxu0 %v450_v28  ;;  %v534_v47 = vld [vmem:[%s812_s1 + $0x94] sm:$0xf0]  ;;  %v536_v49 = vld [vmem:[%s812_s1 + $0xac] sm:$0xf]  ;;  %v459_v50 = vld [vmem:[%s812_s1 + $0xb8] sm:$0xf0]  ;;  %v418_v57 = vor.u32 %v529_v45, %v417_v43 }
   0xd   :  { %299 = vmatpush.bf16.msrb.mxu1 %v474_v29  ;;  %274 = vmatpush.bf16.msra.mxu2 %v454_v33  ;;  %v15_v51 = vld [vmem:[%s813_s0] sm:$0xf]  ;;  %v527_v52 = vld [vmem:[%s812_s1 + $0x64] sm:$0xf]  ;;  %v419_v53 = vld [vmem:[%s812_s1 + $0x70] sm:$0xf0]  ;;  %v442_v54 = vor.u32 %v534_v47, %v441_v46  ;;  %v462_v55 = vor.u32 %v536_v49, %v459_v50 }
   0xe   :  { %59 = vst [vmem:[#allocation1] ss:$4 sm:$0xff] %v15_v51  ;;  %v425_v56 = vld [vmem:[%s812_s1 + $0x68] sm:$0xf]  ;;  %v530_v58 = vld [vmem:[%s812_s1 + $0x74] sm:$0xf0]  ;;  %v422_v61 = vor.u32 %v527_v52, %v419_v53 }
   0xf   :  { %v532_v59 = vld [vmem:[%s812_s1 + $0x8c] sm:$0xf]  ;;  %v443_v60 = vld [vmem:[%s812_s1 + $0x98] sm:$0xf0]  ;;  %v401_v62 = vld [vmem:[%s812_s1 + $0x40] sm:$0xf]  ;;  %v426_v2 = vor.u32 %v530_v58, %v425_v56 }
  0x10   :  { %325 = vmatpush.bf16.msrb.mxu3 %v478_v42  ;;  %249 = vmatpush.bf16.msra.mxu0 %v434_v44  ;;  %v525_v63 = vld [vmem:[%s812_s1 + $0x4c] sm:$0xf0]  ;;  %v523_v0 = vld [vmem:[%s812_s1 + $0x44] sm:$0xf]  ;;  %v403_v1 = vld [vmem:[%s812_s1 + $0x50] sm:$0xf0]  ;;  %v446_v3 = vor.u32 %v532_v59, %v443_v60 }
  0x11   :  { %300 = vmatpush.bf16.msrb.mxu1 %v458_v41  ;;  %275 = vmatpush.bf16.msra.mxu2 %v438_v48  ;;  %v385_v4 = vld [vmem:[%s812_s1 + $0x20] sm:$0xf]  ;;  %v409_v5 = vld [vmem:[%s812_s1 + $0x48] sm:$0xf]  ;;  %v402_v6 = vor.u32 %v525_v63, %v401_v62  ;;  %v526_v7 = vld [vmem:[%s812_s1 + $0x54] sm:$0xf0]  ;;  %v406_v11 = vor.u32 %v523_v0, %v403_v1 }
  0x12   :  { %v528_v8 = vld [vmem:[%s812_s1 + $0x6c] sm:$0xf]  ;;  %v427_v9 = vld [vmem:[%s812_s1 + $0x78] sm:$0xf0]  ;;  %v521_v12 = vld [vmem:[%s812_s1 + $0x2c] sm:$0xf0]  ;;  %v410_v15 = vor.u32 %v526_v7, %v409_v5 }
  0x13   :  { %v519_v13 = vld [vmem:[%s812_s1 + $0x24] sm:$0xf]  ;;  %v387_v14 = vld [vmem:[%s812_s1 + $0x30] sm:$0xf0]  ;;  %v430_v16 = vor.u32 %v528_v8, %v427_v9  ;;  %v393_v17 = vld [vmem:[%s812_s1 + $0x28] sm:$0xf]  ;;  %v386_v18 = vor.u32 %v521_v12, %v385_v4 }
  0x14   :  { %326 = vmatpush.bf16.msrb.mxu3 %v462_v55  ;;  %250 = vmatpush.bf16.msra.mxu0 %v418_v57  ;;  %v522_v19 = vld [vmem:[%s812_s1 + $0x34] sm:$0xf0]  ;;  %v524_v20 = vld [vmem:[%s812_s1 + $0x4c] sm:$0xf]  ;;  %v411_v21 = vld [vmem:[%s812_s1 + $0x58] sm:$0xf0]  ;;  %v390_v23 = vor.u32 %v519_v13, %v387_v14 }
  0x15   :  { %301 = vmatpush.bf16.msrb.mxu1 %v442_v54  ;;  %276 = vmatpush.bf16.msra.mxu2 %v422_v61  ;;  %v730_v10 = vld.sshfl [vmem:[#allocation1 + $0x8] sm:$0xff pattern:$0x73625140]  ;;  %v553_v22 = vmov 0   ;;  %v369_v24 = vld [vmem:[%s812_s1] sm:$0xf]  ;;  %v394_v30 = vor.u32 %v522_v19, %v393_v17  ;;  %v414_v31 = vor.u32 %v524_v20, %v411_v21 }
  0x16   :  { %511 = vmatmul.msk.bf16.vlgmr.msra.gmra.mxu1 %vm243_vm0, %v730_v10  ;;  %513 = vmatmul.msk.bf16.vlgmr.msra.gmra.mxu3 %vm243_vm0, %v730_v10  ;;  %v517_v25 = vld [vmem:[%s812_s1 + $0xc] sm:$0xf0]  ;;  %v515_v26 = vld [vmem:[%s812_s1 + $0x4] sm:$0xf]  ;;  %v371_v27 = vld [vmem:[%s812_s1 + $0x10] sm:$0xf0] }
  0x17   :  { %552 = vset.pattern.permute.xlu0 %v553_v22  ;;  %v548_v28 = vld [vmem:[%s812_s1 + $0x10c] sm:$0xf]  ;;  %v507_v29 = vld [vmem:[%s812_s1 + $0x118] sm:$0xf0]  ;;  %v547_v32 = vld [vmem:[%s812_s1 + $0x104] sm:$0xf]  ;;  %v370_v35 = vor.u32 %v517_v25, %v369_v24  ;;  %v374_v38 = vor.u32 %v515_v26, %v371_v27 }
  0x18   :  { %327 = vmatpush.bf16.msrb.mxu3 %v446_v3  ;;  %251 = vmatpush.bf16.msra.mxu0 %v402_v6  ;;  %v499_v33 = vld [vmem:[%s812_s1 + $0x110] sm:$0xf0]  ;;  %v52_v34 = vld [vmem:[%s814_s2] sm:$0x7]  ;;  %v377_v36 = vld [vmem:[%s812_s1 + $0x8] sm:$0xf]  ;;  %v510_v41 = vor.u32 %v548_v28, %v507_v29 }
  0x19   :  { %302 = vmatpush.bf16.msrb.mxu1 %v426_v2  ;;  %277 = vmatpush.bf16.msra.mxu2 %v406_v11  ;;  %v518_v37 = vld [vmem:[%s812_s1 + $0x14] sm:$0xf0]  ;;  %v520_v39 = vld [vmem:[%s812_s1 + $0x2c] sm:$0xf]  ;;  %v395_v40 = vld [vmem:[%s812_s1 + $0x38] sm:$0xf0]  ;;  %v502_v42 = vor.u32 %v547_v32, %v499_v33 }
  0x1a   :  { %55 = vperm.xlu0 %552, %v52_v34   ;;  %v378_v43 = vor.u32 %v518_v37, %v377_v36  ;;  %v60_v44 = vld.sshfl [vmem:[#allocation1] sm:$0xff pattern:$0x73625140]  ;;  %v398_v45 = vor.u32 %v520_v39, %v395_v40  ;;  %v516_v46 = vld [vmem:[%s812_s1 + $0xc] sm:$0xf] }
  0x1b   :  { %v379_v47 = vld [vmem:[%s812_s1 + $0x18] sm:$0xf0] }
  0x1c   :  { %328 = vmatpush.bf16.msrb.mxu3 %v430_v16  ;;  %252 = vmatpush.bf16.msra.mxu0 %v386_v18  ;;  %v382_v48 = vor.u32 %v516_v46, %v379_v47 }
  0x1d   :  { %303 = vmatpush.bf16.msrb.mxu1 %v410_v15  ;;  %278 = vmatpush.bf16.msra.mxu2 %v390_v23 }
  0x20   :  { %329 = vmatpush.bf16.msrb.mxu3 %v414_v31  ;;  %253 = vmatpush.bf16.msra.mxu0 %v370_v35 }
  0x21   :  { %304 = vmatpush.bf16.msrb.mxu1 %v394_v30  ;;  %279 = vmatpush.bf16.msra.mxu2 %v374_v38 }
  0x23   :  { %254 = vmatmul.bf16.vlgmr.msra.gmra.mxu0 %v60_v44 }
  0x24   :  { %344 = vmatpush.bf16.msrb.mxu0 %v510_v41  ;;  %280 = vmatmul.bf16.vlgmr.msra.gmra.mxu2 %v60_v44 }
  0x25   :  { %292 = vmatpush.bf16.msrb.mxu2 %v502_v42  ;;  %305 = vmatpush.bf16.msrb.mxu1 %v378_v43 }
  0x26   :  { %330 = vmatpush.bf16.msrb.mxu3 %v398_v45 }
  0x28   :  { %306 = vmatmul.bf16.vlgmr.msrb.gmra.mxu1 %v60_v44 }
  0x2a   :  { %331 = vmatpush.bf16.msrb.mxu3 %v382_v48 }
  0x2d   :  { %332 = vmatmul.bf16.vlgmr.msrb.gmra.mxu3 %v60_v44 }
  0x33   :  { %514 = vmatmul.msk.bf16.vlgmr.msrb.gmra.mxu0 %vm243_vm0, %v730_v10 }
  0x34   :  { %512 = vmatmul.msk.bf16.vlgmr.msrb.gmra.mxu2 %vm243_vm0, %v730_v10 }
  0x8c   :  { %v56_v58 = vpop.permute.xlu0 %55 }
  0x93   :  { %v268_v49 = vpop.f32.mrf.mxu1 }
  0x99   :  { %v320_v50 = vpop.f32.mrf.mxu3 }
  0x9b   :  { %v270_v51 = vpop.f32.mrf.mxu1 }
  0xa0   :  { %v255_v52 = vpop.f32.mrf.mxu0 }
  0xa1   :  { %v322_v53 = vpop.f32.mrf.mxu3  ;;  %v256_v4 = vadd.f32 %v255_v52, %v56_v58 }
  0xa3   :  { %v269_v10 = vadd.f32 %v268_v49, %v256_v4 }
  0xa5   :  { %v307_v54 = vpop.f32.mrf.mxu1 }
  0xa6   :  { %v308_v60 = vadd.f32 %v307_v54, %v56_v58 }
  0xa7   :  { %v281_v55 = vpop.f32.mrf.mxu2 }
  0xa8   :  { %v257_v56 = vpop.f32.mrf.mxu0  ;;  %v321_v1 = vadd.f32 %v320_v50, %v308_v60  ;;  %v282_v5 = vadd.f32 %v281_v55, %v56_v58 }
  0xad   :  { %v309_v57 = vpop.f32.mrf.mxu1 }
  0xaf   :  { %v283_v61 = vpop.f32.mrf.mxu2 }
  0xb0   :  { %v333_v59 = vpop.f32.mrf.mxu3  ;;  %v346_v63 = vpop.f32.mrf.mxu0 }
  0xb1   :  { %v334_v62 = vadd.f32 %v333_v59, %v56_v58 }
  0xb3   :  { %v347_v0 = vadd.f32 %v346_v63, %v334_v62 }
  0xb5   :  { %v355_v2 = vrot.slane %v347_v0, 4 }
  0xb7   :  { %v358_v3 = vsel %vm356_vm1, %v321_v1, %v355_v2  ;;  %v294_v7 = vpop.f32.mrf.mxu2 }
  0xb8   :  { %362 = vst [vmem:[%s815_s3 + $0x8] sm:$0x77] %v358_v3  ;;  %v335_v6 = vpop.f32.mrf.mxu3  ;;  %v295_v8 = vadd.f32 %v294_v7, %v282_v5  ;;  %v348_v9 = vpop.f32.mrf.mxu0 }
  0xba   :  { %v354_v11 = vrot.slane %v295_v8, 4 }
  0xbc   :  { %v357_v12 = vsel %vm356_vm1, %v269_v10, %v354_v11 }
  0xbd   :  { %361 = vst [vmem:[%s815_s3] sm:$0x77] %v357_v12 }
  0xbf   :  { %v296_v13 = vpop.f32.mrf.mxu2 }

</bundles_post_ra>
